<compile_context>
chip_gen: v5e
topology: v5e:2x2
jax: 0.10.0
libtpu: 0.0.40
codegen_flags: <defaults>
</compile_context>

<pallas_src>
import functools

import numpy as np
import jax
import jax.numpy as jnp
from jax.experimental import pallas as pl
from jax.experimental.pallas import tpu as pltpu

# Same primes as the CUDA fast_hash (supports up to 7 input dims).
_PRIMES = (1, 2654435761, 805459861, 3674653429, 2097192037, 1434869437, 2165219737)


def _grid_encode_kernel(scale_ref, res_ref, hsize_ref, use_hash_ref,
                        x_ref, emb_ref, out_ref, *, D):
    """One grid step == (one resolution level, one tile of points).

    scale_ref/res_ref/hsize_ref/use_hash_ref: (L,) per-level scalars in SMEM.
    x_ref:   (D, TB)       f32, lane-major points already normalized to [0, 1].
    emb_ref: (1, F, T_pad) bf16, zero-padded, pre-transposed table of this level.
    out_ref: (1, F, TB)    f32, lane-dense output slab for this (level, tile).
    """
    lev = pl.program_id(0)
    scale = scale_ref[lev]                          # f32 scalar
    res_u = res_ref[lev].astype(jnp.uint32)         # grid resolution of this level
    hsize = hsize_ref[lev]                          # int32 hashmap size of this level
    use_hash = use_hash_ref[lev] != 0               # bool: level uses hashing
    mask_u = (hsize - 1).astype(jnp.uint32)         # hsize is a power of 2 when hashing

    x = x_ref[...]                                  # (D, TB), B on lanes
    TB = x.shape[1]
    T = emb_ref.shape[2]

    pos = x * scale + 0.5
    pos_grid = jnp.floor(pos)
    frac = pos - pos_grid                           # (D, TB)
    pos_grid_u = pos_grid.astype(jnp.int32).astype(jnp.uint32)

    # Hoist per-dimension corner terms out of the 2^D corner loop:
    # weights (1-f, f), hash parts g*prime, linear parts g*stride — 2 per dim.
    w_parts, h_parts, l_parts = [], [], []
    stride = jnp.uint32(1)
    for d in range(D):
        f_d = frac[d:d + 1, :]                      # (1, TB) f32
        g0 = pos_grid_u[d:d + 1, :]                 # (1, TB) u32
        g1 = g0 + jnp.uint32(1)
        prime = jnp.uint32(_PRIMES[d])
        w_parts.append((1.0 - f_d, f_d))
        h_parts.append((g0 * prime, g1 * prime))
        l_parts.append((g0 * stride, g1 * stride))
        stride = stride * res_u

    # One-hot scatter matrix, (T, B): T on sublanes, B on lanes.
    iota_t = jax.lax.broadcasted_iota(jnp.int32, (T, TB), 0)
    W = jnp.zeros((T, TB), jnp.float32)

    # Statically unrolled loop over the 2^D interpolation corners.
    for c in range(2 ** D):
        bit0 = c & 1
        w = w_parts[0][bit0]                        # (1, TB)
        hsh = h_parts[0][bit0]                      # (1, TB) u32
        lin = l_parts[0][bit0]                      # (1, TB) u32
        for d in range(1, D):
            bit = (c >> d) & 1
            w = w * w_parts[d][bit]
            hsh = hsh ^ h_parts[d][bit]
            lin = lin + l_parts[d][bit]
        idx = jnp.where(use_hash, hsh & mask_u, lin).astype(jnp.int32)  # (1, TB)
        W = W + jnp.where(iota_t == idx, w, 0.0)    # fused one-hot accumulate

    emb_t = emb_ref[0]                              # (F, T) bf16, pre-transposed
    # Native bf16 MXU matmul, f32 accumulate; output (F, TB) is lane-dense in B.
    out_ref[0] = jnp.dot(emb_t, W.astype(jnp.bfloat16),
                         preferred_element_type=jnp.float32)


def build_grid_encoder(d=3, L=4, F=2, b=2.0, N_min=4, log2_hashmap_size=8,
                       gridtype='hash', seed=0):
    """Deterministic parameter construction mirroring GridEncoder.__init__."""
    max_params = 2 ** log2_hashmap_size
    offsets = []
    off = 0
    for l in range(L):
        N_l = int(np.ceil(N_min * b ** l))
        T = min(max_params, (N_l + 1) ** d)
        offsets.append(off)
        off += T
    offsets.append(off)
    offsets = np.array(offsets, dtype=np.int64)

    S = np.log2(b)
    H = N_min
    scales = np.array([np.exp2(l * S) * H - 1.0 for l in range(L)], np.float32)
    resolutions = np.array([int(np.ceil(float(scales[l]))) + 1 for l in range(L)],
                           np.int32)
    hashmap_sizes = (offsets[1:] - offsets[:-1]).astype(np.int32)
    use_hash = np.array(
        [1 if (gridtype == 'hash'
               and int(resolutions[l]) ** d > int(hashmap_sizes[l])) else 0
         for l in range(L)], np.int32)

    # reset_parameters(): uniform(-1e-4, 1e-4)
    std = 1e-4
    key = jax.random.PRNGKey(seed)
    embeddings = jax.random.uniform(key, (int(off), F), jnp.float32, -std, std)
    emb_np = np.asarray(embeddings)

    # Repack per-level tables, pre-transposed to (L, F, T_pad) in bf16.
    # T_pad multiple of 256 keeps W lane-dense and MXU contraction passes whole.
    T_max = int(max(hashmap_sizes))
    T_pad = -(-T_max // 256) * 256
    emb_t = np.zeros((L, F, T_pad), np.float32)
    for l in range(L):
        T_l = int(hashmap_sizes[l])
        emb_t[l, :, :T_l] = emb_np[offsets[l]:offsets[l] + T_l].T

    return dict(d=d, L=L, F=F, gridtype=gridtype,
                offsets=offsets, scales=scales, resolutions=resolutions,
                hashmap_sizes=hashmap_sizes, use_hash=use_hash,
                embeddings=emb_np,
                emb_t_padded=jnp.asarray(emb_t, dtype=jnp.bfloat16),
                scales_j=jnp.asarray(scales),
                resolutions_j=jnp.asarray(resolutions),
                hashmap_sizes_j=jnp.asarray(hashmap_sizes),
                use_hash_j=jnp.asarray(use_hash))


@functools.partial(jax.jit, static_argnames=('d', 'L', 'F', 'bound'))
def grid_encoder_forward(inputs, emb_t_padded, scales, resolutions, hashmap_sizes,
                         use_hash, *, d, L, F, bound=1.0):
    # GridEncoder.forward glue: normalize to [0, 1], flatten prefix dims.
    x = (inputs + bound) / (2.0 * bound)
    prefix = inputs.shape[:-1]
    x = x.reshape(-1, d).astype(jnp.float32)
    B = x.shape[0]
    T_pad = emb_t_padded.shape[2]

    # Lane-major points (D, B_pad); tile B so each grid step handles TB lanes.
    TB = min(512, -(-B // 128) * 128)
    B_pad = -(-B // TB) * TB
    nb = B_pad // TB
    x_t = jnp.transpose(x, (1, 0))
    if B_pad != B:
        x_t = jnp.pad(x_t, ((0, 0), (0, B_pad - B)))

    out = pl.pallas_call(
        functools.partial(_grid_encode_kernel, D=d),
        out_shape=jax.ShapeDtypeStruct((L, F, B_pad), jnp.float32),
        grid=(L, nb),
        in_specs=[
            pl.BlockSpec(memory_space=pltpu.MemorySpace.SMEM),   # scales (L,)
            pl.BlockSpec(memory_space=pltpu.MemorySpace.SMEM),   # resolutions (L,)
            pl.BlockSpec(memory_space=pltpu.MemorySpace.SMEM),   # hashmap sizes (L,)
            pl.BlockSpec(memory_space=pltpu.MemorySpace.SMEM),   # use_hash flags (L,)
            pl.BlockSpec((d, TB), lambda l, b: (0, b)),          # point tile (lane-major)
            pl.BlockSpec((1, F, T_pad), lambda l, b: (l, 0, 0)), # level-l table (bf16)
        ],
        out_specs=pl.BlockSpec((1, F, TB), lambda l, b: (l, 0, b)),
        compiler_params=pltpu.CompilerParams(
            dimension_semantics=("parallel", "parallel"),
            vmem_limit_bytes=32 * 1024 * 1024),
    )(scales, resolutions, hashmap_sizes, use_hash, x_t, emb_t_padded)

    # (L, F, B) -> (B, L, F) -> (B, L*F): torch's permute(1,0,2).reshape(B, L*F).
    out = out[:, :, :B]
    out = jnp.transpose(out, (2, 0, 1)).reshape(B, L * F)
    return out.reshape(prefix + (L * F,))


def grid_encoder_ref(inputs, params, bound=1.0):
    """Pure NumPy reference matching the CUDA grid_encode_forward semantics."""
    d, L, F = params['d'], params['L'], params['F']
    emb, offsets = params['embeddings'], params['offsets']
    x = (np.asarray(inputs, np.float32) + np.float32(bound)) / np.float32(2 * bound)
    prefix = x.shape[:-1]
    x = x.reshape(-1, d)
    B = x.shape[0]
    out = np.zeros((L, B, F), np.float32)
    for l in range(L):
        scale = np.float32(params['scales'][l])
        res = int(params['resolutions'][l])
        hs = int(params['hashmap_sizes'][l])
        pos = x * scale + np.float32(0.5)
        pg = np.floor(pos)
        fr = pos - pg
        pg = pg.astype(np.int64)
        acc = np.zeros((B, F), np.float32)
        for c in range(2 ** d):
            w = np.ones((B,), np.float32)
            lin = np.zeros((B,), np.int64)
            hsh = np.zeros((B,), np.uint32)
            stride = 1
            for dd in range(d):
                bit = (c >> dd) & 1
                g = pg[:, dd] + bit
                w = w * (fr[:, dd] if bit else (np.float32(1.0) - fr[:, dd]))
                lin = lin + g * stride
                stride *= res
                hsh = hsh ^ (g.astype(np.uint32) * np.uint32(_PRIMES[dd]))
            if params['use_hash'][l]:
                idx = (hsh % np.uint32(hs)).astype(np.int64)
            else:
                idx = lin % hs
            acc += w[:, None] * emb[offsets[l] + idx]
        out[l] = acc
    out = out.transpose(1, 0, 2).reshape(B, L * F)
    return out.reshape(prefix + (L * F,))


if __name__ == "__main__":
    d, L, F = 3, 4, 2
    params = build_grid_encoder(d=d, L=L, F=F, b=2.0, N_min=4,
                                log2_hashmap_size=8, gridtype='hash', seed=0)

    key = jax.random.PRNGKey(0)
    _, k_in = jax.random.split(key)
    # prefix shape (2, 64), input_dim 3 -> 128 points.
    inputs = jax.random.uniform(k_in, (2, 64, d), jnp.float32, -1.0, 1.0)

    out = grid_encoder_forward(inputs, params['emb_t_padded'], params['scales_j'],
                               params['resolutions_j'], params['hashmap_sizes_j'],
                               params['use_hash_j'], d=d, L=L, F=F, bound=1.0)
    out = jax.block_until_ready(out)

    ref = grid_encoder_ref(np.asarray(inputs), params, bound=1.0)
    assert out.shape == (2, 64, L * F), out.shape
    if not np.allclose(np.asarray(out), ref, rtol=1e-2, atol=1e-5):
        max_err = float(np.max(np.abs(np.asarray(out) - ref)))
        raise AssertionError(f"kernel/reference mismatch, max abs err = {max_err}")
    print("KERNEL_OK")
</pallas_src>

<mosaic_0001>
module attributes {stable_mosaic.version = 11 : i64} {
  func.func @_grid_encode_kernel(%arg0: i32, %arg1: i32, %arg2: memref<4xf32, #tpu.memory_space<smem>>, %arg3: memref<4xi32, #tpu.memory_space<smem>>, %arg4: memref<4xi32, #tpu.memory_space<smem>>, %arg5: memref<4xi32, #tpu.memory_space<smem>>, %arg6: memref<3x128xf32, #tpu.memory_space<vmem>>, %arg7: memref<1x2x256xbf16, #tpu.memory_space<vmem>>, %arg8: memref<1x2x128xf32, #tpu.memory_space<vmem>>) attributes {dimension_semantics = [#tpu.dimension_semantics<parallel>, #tpu.dimension_semantics<parallel>], iteration_bounds = array<i64: 4, 1>, scalar_prefetch = 0 : i64, scratch_operands = 0 : i64, tpu.core_type = #tpu.core_type<tc>, window_params = [{transform_indices = @transform_0, window_bounds = array<i64: 4>}, {transform_indices = @transform_1, window_bounds = array<i64: 4>}, {transform_indices = @transform_2, window_bounds = array<i64: 4>}, {transform_indices = @transform_3, window_bounds = array<i64: 4>}, {transform_indices = @transform_4, window_bounds = array<i64: 3, 128>}, {transform_indices = @transform_5, window_bounds = array<i64: 1, 2, 256>}, {transform_indices = @transform_6, window_bounds = array<i64: 1, 2, 128>}]} {
    %0 = arith.index_cast %arg0 : i32 to index
    %1 = memref.load %arg2[%0] : memref<4xf32, #tpu.memory_space<smem>>
    %2 = arith.index_cast %arg0 : i32 to index
    %3 = memref.load %arg3[%2] : memref<4xi32, #tpu.memory_space<smem>>
    %4 = arith.index_cast %arg0 : i32 to index
    %5 = memref.load %arg4[%4] : memref<4xi32, #tpu.memory_space<smem>>
    %6 = arith.index_cast %arg0 : i32 to index
    %7 = memref.load %arg5[%6] : memref<4xi32, #tpu.memory_space<smem>>
    %c0_i32 = arith.constant 0 : i32
    %8 = arith.cmpi ne, %7, %c0_i32 : i32
    %c1_i32 = arith.constant 1 : i32
    %9 = arith.subi %5, %c1_i32 : i32
    %c0 = arith.constant 0 : index
    %c0_0 = arith.constant 0 : index
    %10 = vector.load %arg6[%c0, %c0_0] : memref<3x128xf32, #tpu.memory_space<vmem>>, vector<3x128xf32>
    %11 = vector.broadcast %1 : f32 to vector<3x128xf32>
    %12 = arith.mulf %10, %11 : vector<3x128xf32>
    %cst = arith.constant 5.000000e-01 : f32
    %13 = vector.broadcast %cst : f32 to vector<3x128xf32>
    %14 = arith.addf %12, %13 : vector<3x128xf32>
    %15 = math.floor %14 : vector<3x128xf32>
    %16 = arith.subf %14, %15 : vector<3x128xf32>
    %17 = arith.fptosi %15 : vector<3x128xf32> to vector<3x128xi32>
    %18 = vector.extract_strided_slice %16 {offsets = [0, 0], sizes = [1, 128], strides = [1, 1]} : vector<3x128xf32> to vector<1x128xf32>
    %19 = vector.extract_strided_slice %17 {offsets = [0, 0], sizes = [1, 128], strides = [1, 1]} : vector<3x128xi32> to vector<1x128xi32>
    %c1_i32_1 = arith.constant 1 : i32
    %20 = vector.broadcast %c1_i32_1 : i32 to vector<1x128xi32>
    %21 = arith.addi %19, %20 : vector<1x128xi32>
    %cst_2 = arith.constant 1.000000e+00 : f32
    %22 = vector.broadcast %cst_2 : f32 to vector<1x128xf32>
    %23 = arith.subf %22, %18 : vector<1x128xf32>
    %c1_i32_3 = arith.constant 1 : i32
    %24 = vector.broadcast %c1_i32_3 : i32 to vector<1x128xi32>
    %25 = arith.muli %19, %24 : vector<1x128xi32>
    %c1_i32_4 = arith.constant 1 : i32
    %26 = vector.broadcast %c1_i32_4 : i32 to vector<1x128xi32>
    %27 = arith.muli %21, %26 : vector<1x128xi32>
    %c1_i32_5 = arith.constant 1 : i32
    %28 = vector.broadcast %c1_i32_5 : i32 to vector<1x128xi32>
    %29 = arith.muli %19, %28 : vector<1x128xi32>
    %c1_i32_6 = arith.constant 1 : i32
    %30 = vector.broadcast %c1_i32_6 : i32 to vector<1x128xi32>
    %31 = arith.muli %21, %30 : vector<1x128xi32>
    %c1_i32_7 = arith.constant 1 : i32
    %32 = arith.muli %c1_i32_7, %3 : i32
    %33 = vector.extract_strided_slice %16 {offsets = [1, 0], sizes = [1, 128], strides = [1, 1]} : vector<3x128xf32> to vector<1x128xf32>
    %34 = vector.extract_strided_slice %17 {offsets = [1, 0], sizes = [1, 128], strides = [1, 1]} : vector<3x128xi32> to vector<1x128xi32>
    %c1_i32_8 = arith.constant 1 : i32
    %35 = vector.broadcast %c1_i32_8 : i32 to vector<1x128xi32>
    %36 = arith.addi %34, %35 : vector<1x128xi32>
    %cst_9 = arith.constant 1.000000e+00 : f32
    %37 = vector.broadcast %cst_9 : f32 to vector<1x128xf32>
    %38 = arith.subf %37, %33 : vector<1x128xf32>
    %c-1640531535_i32 = arith.constant -1640531535 : i32
    %39 = vector.broadcast %c-1640531535_i32 : i32 to vector<1x128xi32>
    %40 = arith.muli %34, %39 : vector<1x128xi32>
    %c-1640531535_i32_10 = arith.constant -1640531535 : i32
    %41 = vector.broadcast %c-1640531535_i32_10 : i32 to vector<1x128xi32>
    %42 = arith.muli %36, %41 : vector<1x128xi32>
    %43 = vector.broadcast %32 : i32 to vector<1x128xi32>
    %44 = arith.muli %34, %43 : vector<1x128xi32>
    %45 = vector.broadcast %32 : i32 to vector<1x128xi32>
    %46 = arith.muli %36, %45 : vector<1x128xi32>
    %47 = arith.muli %32, %3 : i32
    %48 = vector.extract_strided_slice %16 {offsets = [2, 0], sizes = [1, 128], strides = [1, 1]} : vector<3x128xf32> to vector<1x128xf32>
    %49 = vector.extract_strided_slice %17 {offsets = [2, 0], sizes = [1, 128], strides = [1, 1]} : vector<3x128xi32> to vector<1x128xi32>
    %c1_i32_11 = arith.constant 1 : i32
    %50 = vector.broadcast %c1_i32_11 : i32 to vector<1x128xi32>
    %51 = arith.addi %49, %50 : vector<1x128xi32>
    %cst_12 = arith.constant 1.000000e+00 : f32
    %52 = vector.broadcast %cst_12 : f32 to vector<1x128xf32>
    %53 = arith.subf %52, %48 : vector<1x128xf32>
    %c805459861_i32 = arith.constant 805459861 : i32
    %54 = vector.broadcast %c805459861_i32 : i32 to vector<1x128xi32>
    %55 = arith.muli %49, %54 : vector<1x128xi32>
    %c805459861_i32_13 = arith.constant 805459861 : i32
    %56 = vector.broadcast %c805459861_i32_13 : i32 to vector<1x128xi32>
    %57 = arith.muli %51, %56 : vector<1x128xi32>
    %58 = vector.broadcast %47 : i32 to vector<1x128xi32>
    %59 = arith.muli %49, %58 : vector<1x128xi32>
    %60 = vector.broadcast %47 : i32 to vector<1x128xi32>
    %61 = arith.muli %51, %60 : vector<1x128xi32>
    %62 = tpu.iota {dimensions = array<i32: 0>} : vector<256x128xi32>
    %cst_14 = arith.constant 0.000000e+00 : f32
    %63 = vector.broadcast %cst_14 : f32 to vector<256x128xf32>
    %64 = arith.mulf %23, %38 : vector<1x128xf32>
    %65 = arith.xori %25, %40 : vector<1x128xi32>
    %66 = arith.addi %29, %44 : vector<1x128xi32>
    %67 = arith.mulf %64, %53 : vector<1x128xf32>
    %68 = arith.xori %65, %55 : vector<1x128xi32>
    %69 = arith.addi %66, %59 : vector<1x128xi32>
    %70 = vector.broadcast %9 : i32 to vector<1x128xi32>
    %71 = arith.andi %68, %70 : vector<1x128xi32>
    %72 = arith.select %8, %71, %69 : vector<1x128xi32>
    %73 = vector.broadcast %72 : vector<1x128xi32> to vector<256x128xi32>
    %74 = arith.cmpi eq, %62, %73 : vector<256x128xi32>
    %cst_15 = arith.constant 0.000000e+00 : f32
    %75 = vector.shape_cast %67 : vector<1x128xf32> to vector<1x128xf32>
    %76 = vector.broadcast %75 : vector<1x128xf32> to vector<256x128xf32>
    %77 = vector.broadcast %cst_15 : f32 to vector<256x128xf32>
    %78 = arith.select %74, %76, %77 : vector<256x128xi1>, vector<256x128xf32>
    %79 = arith.addf %63, %78 : vector<256x128xf32>
    %80 = arith.mulf %18, %38 : vector<1x128xf32>
    %81 = arith.xori %27, %40 : vector<1x128xi32>
    %82 = arith.addi %31, %44 : vector<1x128xi32>
    %83 = arith.mulf %80, %53 : vector<1x128xf32>
    %84 = arith.xori %81, %55 : vector<1x128xi32>
    %85 = arith.addi %82, %59 : vector<1x128xi32>
    %86 = vector.broadcast %9 : i32 to vector<1x128xi32>
    %87 = arith.andi %84, %86 : vector<1x128xi32>
    %88 = arith.select %8, %87, %85 : vector<1x128xi32>
    %89 = vector.broadcast %88 : vector<1x128xi32> to vector<256x128xi32>
    %90 = arith.cmpi eq, %62, %89 : vector<256x128xi32>
    %cst_16 = arith.constant 0.000000e+00 : f32
    %91 = vector.shape_cast %83 : vector<1x128xf32> to vector<1x128xf32>
    %92 = vector.broadcast %91 : vector<1x128xf32> to vector<256x128xf32>
    %93 = vector.broadcast %cst_16 : f32 to vector<256x128xf32>
    %94 = arith.select %90, %92, %93 : vector<256x128xi1>, vector<256x128xf32>
    %95 = arith.addf %79, %94 : vector<256x128xf32>
    %96 = arith.mulf %23, %33 : vector<1x128xf32>
    %97 = arith.xori %25, %42 : vector<1x128xi32>
    %98 = arith.addi %29, %46 : vector<1x128xi32>
    %99 = arith.mulf %96, %53 : vector<1x128xf32>
    %100 = arith.xori %97, %55 : vector<1x128xi32>
    %101 = arith.addi %98, %59 : vector<1x128xi32>
    %102 = vector.broadcast %9 : i32 to vector<1x128xi32>
    %103 = arith.andi %100, %102 : vector<1x128xi32>
    %104 = arith.select %8, %103, %101 : vector<1x128xi32>
    %105 = vector.broadcast %104 : vector<1x128xi32> to vector<256x128xi32>
    %106 = arith.cmpi eq, %62, %105 : vector<256x128xi32>
    %cst_17 = arith.constant 0.000000e+00 : f32
    %107 = vector.shape_cast %99 : vector<1x128xf32> to vector<1x128xf32>
    %108 = vector.broadcast %107 : vector<1x128xf32> to vector<256x128xf32>
    %109 = vector.broadcast %cst_17 : f32 to vector<256x128xf32>
    %110 = arith.select %106, %108, %109 : vector<256x128xi1>, vector<256x128xf32>
    %111 = arith.addf %95, %110 : vector<256x128xf32>
    %112 = arith.mulf %18, %33 : vector<1x128xf32>
    %113 = arith.xori %27, %42 : vector<1x128xi32>
    %114 = arith.addi %31, %46 : vector<1x128xi32>
    %115 = arith.mulf %112, %53 : vector<1x128xf32>
    %116 = arith.xori %113, %55 : vector<1x128xi32>
    %117 = arith.addi %114, %59 : vector<1x128xi32>
    %118 = vector.broadcast %9 : i32 to vector<1x128xi32>
    %119 = arith.andi %116, %118 : vector<1x128xi32>
    %120 = arith.select %8, %119, %117 : vector<1x128xi32>
    %121 = vector.broadcast %120 : vector<1x128xi32> to vector<256x128xi32>
    %122 = arith.cmpi eq, %62, %121 : vector<256x128xi32>
    %cst_18 = arith.constant 0.000000e+00 : f32
    %123 = vector.shape_cast %115 : vector<1x128xf32> to vector<1x128xf32>
    %124 = vector.broadcast %123 : vector<1x128xf32> to vector<256x128xf32>
    %125 = vector.broadcast %cst_18 : f32 to vector<256x128xf32>
    %126 = arith.select %122, %124, %125 : vector<256x128xi1>, vector<256x128xf32>
    %127 = arith.addf %111, %126 : vector<256x128xf32>
    %128 = arith.mulf %23, %38 : vector<1x128xf32>
    %129 = arith.xori %25, %40 : vector<1x128xi32>
    %130 = arith.addi %29, %44 : vector<1x128xi32>
    %131 = arith.mulf %128, %48 : vector<1x128xf32>
    %132 = arith.xori %129, %57 : vector<1x128xi32>
    %133 = arith.addi %130, %61 : vector<1x128xi32>
    %134 = vector.broadcast %9 : i32 to vector<1x128xi32>
    %135 = arith.andi %132, %134 : vector<1x128xi32>
    %136 = arith.select %8, %135, %133 : vector<1x128xi32>
    %137 = vector.broadcast %136 : vector<1x128xi32> to vector<256x128xi32>
    %138 = arith.cmpi eq, %62, %137 : vector<256x128xi32>
    %cst_19 = arith.constant 0.000000e+00 : f32
    %139 = vector.shape_cast %131 : vector<1x128xf32> to vector<1x128xf32>
    %140 = vector.broadcast %139 : vector<1x128xf32> to vector<256x128xf32>
    %141 = vector.broadcast %cst_19 : f32 to vector<256x128xf32>
    %142 = arith.select %138, %140, %141 : vector<256x128xi1>, vector<256x128xf32>
    %143 = arith.addf %127, %142 : vector<256x128xf32>
    %144 = arith.mulf %18, %38 : vector<1x128xf32>
    %145 = arith.xori %27, %40 : vector<1x128xi32>
    %146 = arith.addi %31, %44 : vector<1x128xi32>
    %147 = arith.mulf %144, %48 : vector<1x128xf32>
    %148 = arith.xori %145, %57 : vector<1x128xi32>
    %149 = arith.addi %146, %61 : vector<1x128xi32>
    %150 = vector.broadcast %9 : i32 to vector<1x128xi32>
    %151 = arith.andi %148, %150 : vector<1x128xi32>
    %152 = arith.select %8, %151, %149 : vector<1x128xi32>
    %153 = vector.broadcast %152 : vector<1x128xi32> to vector<256x128xi32>
    %154 = arith.cmpi eq, %62, %153 : vector<256x128xi32>
    %cst_20 = arith.constant 0.000000e+00 : f32
    %155 = vector.shape_cast %147 : vector<1x128xf32> to vector<1x128xf32>
    %156 = vector.broadcast %155 : vector<1x128xf32> to vector<256x128xf32>
    %157 = vector.broadcast %cst_20 : f32 to vector<256x128xf32>
    %158 = arith.select %154, %156, %157 : vector<256x128xi1>, vector<256x128xf32>
    %159 = arith.addf %143, %158 : vector<256x128xf32>
    %160 = arith.mulf %23, %33 : vector<1x128xf32>
    %161 = arith.xori %25, %42 : vector<1x128xi32>
    %162 = arith.addi %29, %46 : vector<1x128xi32>
    %163 = arith.mulf %160, %48 : vector<1x128xf32>
    %164 = arith.xori %161, %57 : vector<1x128xi32>
    %165 = arith.addi %162, %61 : vector<1x128xi32>
    %166 = vector.broadcast %9 : i32 to vector<1x128xi32>
    %167 = arith.andi %164, %166 : vector<1x128xi32>
    %168 = arith.select %8, %167, %165 : vector<1x128xi32>
    %169 = vector.broadcast %168 : vector<1x128xi32> to vector<256x128xi32>
    %170 = arith.cmpi eq, %62, %169 : vector<256x128xi32>
    %cst_21 = arith.constant 0.000000e+00 : f32
    %171 = vector.shape_cast %163 : vector<1x128xf32> to vector<1x128xf32>
    %172 = vector.broadcast %171 : vector<1x128xf32> to vector<256x128xf32>
    %173 = vector.broadcast %cst_21 : f32 to vector<256x128xf32>
    %174 = arith.select %170, %172, %173 : vector<256x128xi1>, vector<256x128xf32>
    %175 = arith.addf %159, %174 : vector<256x128xf32>
    %176 = arith.mulf %18, %33 : vector<1x128xf32>
    %177 = arith.xori %27, %42 : vector<1x128xi32>
    %178 = arith.addi %31, %46 : vector<1x128xi32>
    %179 = arith.mulf %176, %48 : vector<1x128xf32>
    %180 = arith.xori %177, %57 : vector<1x128xi32>
    %181 = arith.addi %178, %61 : vector<1x128xi32>
    %182 = vector.broadcast %9 : i32 to vector<1x128xi32>
    %183 = arith.andi %180, %182 : vector<1x128xi32>
    %184 = arith.select %8, %183, %181 : vector<1x128xi32>
    %185 = vector.broadcast %184 : vector<1x128xi32> to vector<256x128xi32>
    %186 = arith.cmpi eq, %62, %185 : vector<256x128xi32>
    %cst_22 = arith.constant 0.000000e+00 : f32
    %187 = vector.shape_cast %179 : vector<1x128xf32> to vector<1x128xf32>
    %188 = vector.broadcast %187 : vector<1x128xf32> to vector<256x128xf32>
    %189 = vector.broadcast %cst_22 : f32 to vector<256x128xf32>
    %190 = arith.select %186, %188, %189 : vector<256x128xi1>, vector<256x128xf32>
    %191 = arith.addf %175, %190 : vector<256x128xf32>
    %c0_23 = arith.constant 0 : index
    %c0_24 = arith.constant 0 : index
    %c0_25 = arith.constant 0 : index
    %192 = vector.load %arg7[%c0_23, %c0_24, %c0_25] : memref<1x2x256xbf16, #tpu.memory_space<vmem>>, vector<1x2x256xbf16>
    %193 = vector.shape_cast %192 : vector<1x2x256xbf16> to vector<2x256xbf16>
    %194 = arith.truncf %191 : vector<256x128xf32> to vector<256x128xbf16>
    %cst_26 = arith.constant dense<0.000000e+00> : vector<2x128xf32>
    %195 = tpu.matmul %193, %194, %cst_26 {dimension_numbers = #tpu.dot_dimension_numbers<[1], [0], [0], [1], [0, 0, 1, 1], [], []>} : vector<2x256xbf16>, vector<256x128xbf16>, vector<2x128xf32> -> vector<2x128xf32>
    %c0_27 = arith.constant 0 : index
    %c0_28 = arith.constant 0 : index
    %c0_29 = arith.constant 0 : index
    %196 = vector.load %arg8[%c0_27, %c0_28, %c0_29] : memref<1x2x128xf32, #tpu.memory_space<vmem>>, vector<1x2x128xf32>
    %197 = vector.shape_cast %196 : vector<1x2x128xf32> to vector<2x128xf32>
    %198 = vector.shape_cast %195 : vector<2x128xf32> to vector<1x2x128xf32>
    tpu.vector_store %arg8[%c0_27, %c0_28, %c0_29], %198 {strides = array<i32>} : memref<1x2x128xf32, #tpu.memory_space<vmem>>, vector<1x2x128xf32>,
    return
  }
  func.func @transform_0(%arg0: i32, %arg1: i32) -> i32 {
    %c0_i32 = arith.constant 0 : i32
    %c0_i32_0 = arith.constant 0 : i32
    return %c0_i32 : i32
  }
  func.func @transform_1(%arg0: i32, %arg1: i32) -> i32 {
    %c0_i32 = arith.constant 0 : i32
    %c0_i32_0 = arith.constant 0 : i32
    return %c0_i32 : i32
  }
  func.func @transform_2(%arg0: i32, %arg1: i32) -> i32 {
    %c0_i32 = arith.constant 0 : i32
    %c0_i32_0 = arith.constant 0 : i32
    return %c0_i32 : i32
  }
  func.func @transform_3(%arg0: i32, %arg1: i32) -> i32 {
    %c0_i32 = arith.constant 0 : i32
    %c0_i32_0 = arith.constant 0 : i32
    return %c0_i32 : i32
  }
  func.func @transform_4(%arg0: i32, %arg1: i32) -> (i32, i32) {
    %c0_i32 = arith.constant 0 : i32
    %c0_i32_0 = arith.constant 0 : i32
    return %c0_i32, %arg1 : i32, i32
  }
  func.func @transform_5(%arg0: i32, %arg1: i32) -> (i32, i32, i32) {
    %c0_i32 = arith.constant 0 : i32
    %c0_i32_0 = arith.constant 0 : i32
    %c0_i32_1 = arith.constant 0 : i32
    return %arg0, %c0_i32, %c0_i32_0 : i32, i32, i32
  }
  func.func @transform_6(%arg0: i32, %arg1: i32) -> (i32, i32, i32) {
    %c0_i32 = arith.constant 0 : i32
    %c0_i32_0 = arith.constant 0 : i32
    return %arg0, %c0_i32, %arg1 : i32, i32, i32
  }
}

</mosaic_0001>

<bundles_post_ra>
// kernel: grid_encoder_forward.1
= control target key start
LH: loop header
LB: loop body
LE: loop exit
PB: predicated region body
PF: predicated region fallthrough
CT: control target
= control target key end

     0   :  { %11 = vsyncpa [#allocation3], 0  ;;  %s2550_s0 = inlined_call_operand.vmem [shape: f32[4], index: 0, kind: input, shape index: {}]   ;;  %s2551_s1 = inlined_call_operand.vmem [shape: s32[4], index: 1, kind: input, shape index: {}]   ;;  %s2552_s2 = inlined_call_operand.vmem [shape: s32[4], index: 2, kind: input, shape index: {}]   ;;  %s2553_s3 = inlined_call_operand.vmem [shape: s32[4], index: 3, kind: input, shape index: {}]   ;;  %s2554_s4 = inlined_call_operand.vmem [shape: f32[3,128], index: 4, kind: input, shape index: {}]   ;;  %s2555_s5 = inlined_call_operand.vmem [shape: bf16[4,2,256], index: 5, kind: input, shape index: {}]   ;;  %s2556_s6 = inlined_call_operand.vmem [shape: f32[4,2,128], index: 6, kind: output, shape index: {}]  }
   0x1   :  { %12 = vsyncpa [#allocation5], 0 }
   0x2   :  { %13 = vsyncpa [#allocation8], 0  ;;  %s1652_s21 = smov 0   ;;  %s1654_s22 = smov 0  }
   0x3   :  { %s1656_s23 = smov 0  }
   0x4 LB: > { %s222_s26 = sshll.u32 %s2551_s1, 4  ;;  %s1431_s27 = sadd.s32 4294967295, %s1611_s23   ;;  %s1611_s23 = sphi %s1656_s23, %s19_s23   ;;  %s1607_s22 = sphi %s1654_s22, %s2563_s22   ;;  %s1603_s21 = sphi %s1652_s21, %s2562_s21   ;;  %s223_s26 = int_to_ptr.vmem [resolvable:$true] %s222_s26 }
   0x5   : > { %p1433_p0 = scmp.ge.s32.totalorder %s1611_s23, 1  ;;  %p200_p1 = scmp.lt.s32.totalorder %s1611_s23, 5 }
   0x6   : > { %p1673_p2 = scmp.eq.s32.totalorder %s1431_s27, 0  ;;  %s31_s30 = sadd.s32 1, %s1607_s22 }
   0x7   : > { %p1677_p3 = pnand %p1433_p0, %p200_p1  ;;  %s212_s9 = sshll.u32 %s2550_s0, 4  ;;  %s213_s9 = int_to_ptr.vmem [resolvable:$true] %s212_s9 }
   0x8   : > { %p33_p6 = scmp.ge.s32.totalorder %s31_s30, 4  ;;  %s232_s13 = sshll.u32 %s2552_s2, 4  ;;  %s233_s13 = int_to_ptr.vmem [resolvable:$true] %s232_s13 }
   0x9   : > { %p1468_p4 = pneg %p1677_p3  ;;  %s1613_s14 = smov [#allocation4]  }
   0xa   : > { %s2565_s30 = smov (%p33_p6, %s31_s30), 0  ;;  %s1614_s15 = smov [#allocation2]  }
   0xb   : > { %p1689_p5 = pnand %p1673_p2, %p1468_p4  ;;  %s1615_s16 = smov [#allocation6]  }
   0xc   : > { %s242_s19 = sshll.u32 %s2553_s3, 4  ;;  %s1616_s20 = smov [#allocation7]   ;;  %s243_s19 = int_to_ptr.vmem [resolvable:$true] %s242_s19 }
   0xd   : > { %1474 = dma.vmem_to_smem (!%p1689_p5), %s223_s26, 16, %s1613_s14, [#allocation5]  }
   0xe   : > { %1471 = dma.vmem_to_smem (!%p1689_p5), %s213_s9, 16, %s1614_s15, [#allocation3]  }
   0xf   : > { %1477 = dma.vmem_to_smem (!%p1689_p5), %s233_s13, 16, %s1615_s16, [#allocation5]  }
  0x10   : > { %1480 = dma.vmem_to_smem (!%p1689_p5), %s243_s19, 16, %s1616_s20, [#allocation8]  }
  0x11   : > { %269 = sbr.rel (%p1677_p3) target bundleno = 405 (0x195), region = 44 }
  0x16   : > { %1590 = dma.done.wait (%p1673_p2), [#allocation3], 16  }
  0x17   : > { %1592 = vsyncadd (%p1673_p2), [#allocation3], 4294967280 }
  0x18   : > { %1594 = dma.done.wait (%p1673_p2), [#allocation5], 32  }
  0x19   : > { %1596 = vsyncadd (%p1673_p2), [#allocation5], 4294967264 }
  0x1a   : > { %1598 = dma.done.wait (%p1673_p2), [#allocation8], 16  }
  0x1b   : > { %1600 = vsyncadd (%p1673_p2), [#allocation8], 4294967280 }
  0x1c   : > { %291 = sfence }
  0x1d   : > { %s336_s24 = sld [smem:[#allocation2 + %s1603_s21]]  ;;  %v342_v0 = vld [vmem:[%s2554_s4] sm:$0x7]  ;;  %v362_v1 = vlaneseq  ;;  %p325_p8 = scmp.lt.s32.totalorder %s1603_s21, 3 }
  0x1e   : > { %s1725_s25 = sld [smem:[#allocation4 + %s1603_s21]] }
  0x1f   : > { %s338_s26 = sld [smem:[#allocation6 + %s1603_s21]]  ;;  %v1732_v4 = vshrl.u32 %v362_v1, 7 }
  0x20   : > { %s339_s27 = sld [smem:[#allocation7 + %s1603_s21]]  ;;  %s2567_s21 = smov (!%p325_p8, %s1603_s21), 3 }
  0x21   : > { %v1738_v8 = vadd.s32 112, %v1732_v4  ;;  %v1743_v13 = vadd.s32 120, %v1732_v4  ;;  %v1748_v15 = vadd.s32 240, %v1732_v4  ;;  %v1751_v16 = vadd.s32 248, %v1732_v4  ;;  %s1445_s10 = sshll.u32 %s2567_s21, 1 }
  0x22   : > { %s328_s13 = scalar_lea.vmem %s2555_s5, %s1445_s10  ;;  %s335_s16 = scalar_lea.vmem %s2556_s6, %s1445_s10 }
  0x23   : > { %v343_v2 = vstv %s336_s24 }
  0x24   : > { %v344_v3 = vmul.f32 %v343_v2, %v342_v0  ;;  %s356_s28 = smul.u32 %s1725_s25, %s1725_s25  ;;  %v353_v7 = vstv %s1725_s25 }
  0x25   : > { %s1447_s8 = sadd.s32 4294967295, %s338_s26 }
  0x26   : > { %p340_p7 = scmp.ne.s32.totalorder %s339_s27, 0  ;;  %v345_v5 = vadd.f32 0.5, %v344_v3  ;;  %v1740_v11 = vstv %s356_s28  ;;  %v1745_v14 = vstv %s1447_s8 }
  0x28   : > { %v346_v6 = vfloor.f32 %v345_v5  ;;  %s412_s9 = scalar_select %p340_p7, 1, 0 }
  0x2a   : > { %v347_v9 = vsub.f32 %v345_v5, %v346_v6  ;;  %v1451_v10 = vcvt.f32.s32 %v346_v6  ;;  %v413_v12 = vstv %s412_s9 }
  0x2b   : > { %vm1755_vm0 = vcmp.eq.s32.totalorder %v413_v12, 1 }
  0x2c   : > { %v1753_v17 = vadd.s32 1, %v1451_v10  ;;  %v350_v18 = vsub.f32 1.0, %v347_v9  ;;  %v351_v19 = vmul.u32 2654435761, %v1451_v10  ;;  %v354_v20 = vmul.u32 %v1451_v10, %v353_v7 }
  0x2d   : > { %v357_v22 = vmul.u32 805459861, %v1451_v10  ;;  %v360_v23 = vmul.u32 %v1451_v10, %v1740_v11  ;;  %v621_v24 = vrot.slane %v347_v9, 1  ;;  %v1760_v25 = vrot.slane %v347_v9, 2 }
  0x2e   : > { %v352_v26 = vmul.u32 2654435761, %v1753_v17  ;;  %v355_v27 = vmul.u32 %v353_v7, %v1753_v17  ;;  %v358_v28 = vmul.u32 805459861, %v1753_v17  ;;  %v361_v29 = vmul.u32 %v1740_v11, %v1753_v17 }
  0x2f   : > { %v396_v30 = vrot.slane %v350_v18, 1  ;;  %v399_v31 = vrot.slane %v351_v19, 1  ;;  %v401_v32 = vrot.slane %v354_v20, 1  ;;  %v403_v33 = vrot.slane %v350_v18, 2 }
  0x30   : > { %v406_v34 = vrot.slane %v357_v22, 2  ;;  %v408_v35 = vrot.slane %v360_v23, 2  ;;  %v623_v36 = vmul.f32 %v621_v24, %v350_v18  ;;  %v624_v37 = vrot.slane %v352_v26, 1 }
  0x31   : > { %v398_v38 = vmul.f32 %v396_v30, %v350_v18  ;;  %v1767_v39 = vxor.u32 %v1451_v10, %v399_v31  ;;  %v402_v40 = vadd.s32 %v1451_v10, %v401_v32  ;;  %v514_v41 = vmul.f32 %v396_v30, %v347_v9 }
  0x32   : > { %v1770_v42 = vxor.u32 %v399_v31, %v1753_v17  ;;  %v516_v43 = vadd.s32 %v401_v32, %v1753_v17  ;;  %v1773_v44 = vxor.u32 %v1451_v10, %v624_v37  ;;  %v626_v45 = vrot.slane %v355_v27, 1 }
  0x33   : > { %v405_v46 = vmul.f32 %v403_v33, %v398_v38  ;;  %v407_v47 = vxor.u32 %v406_v34, %v1767_v39  ;;  %v409_v48 = vadd.s32 %v408_v35, %v402_v40  ;;  %v517_v49 = vmul.f32 %v514_v41, %v403_v33 }
  0x34   : > { %v518_v50 = vxor.u32 %v1770_v42, %v406_v34  ;;  %v519_v51 = vadd.s32 %v516_v43, %v408_v35  ;;  %v627_v52 = vadd.s32 %v1451_v10, %v626_v45  ;;  %v628_v53 = vmul.f32 %v623_v36, %v403_v33 }
  0x35   : > { %v411_v54 = vand.u32 %v1745_v14, %v407_v47  ;;  %v1778_v55 = vperm.slane %v405_v46, 0  ;;  %v1780_v56 = vperm.slane %v517_v49, 0  ;;  %v629_v57 = vxor.u32 %v1773_v44, %v406_v34 }
  0x36   : > { %v520_v58 = vand.u32 %v518_v50, %v1745_v14  ;;  %v630_v59 = vadd.s32 %v627_v52, %v408_v35  ;;  %v1784_v60 = vperm.slane %v628_v53, 0  ;;  %v731_v61 = vmul.f32 %v621_v24, %v347_v9 }
  0x37   : > { %v415_v62 = vsel %vm1755_vm0, %v411_v54, %v409_v48  ;;  %v631_v63 = vand.u32 %v629_v57, %v1745_v14  ;;  %v1790_v0 = vxor.u32 %v624_v37, %v1753_v17  ;;  %v733_v1 = vadd.s32 %v626_v45, %v1753_v17 }
  0x38   : > { %v1793_v2 = vperm.slane %v415_v62, 0  ;;  %v521_v3 = vsel %vm1755_vm0, %v520_v58, %v519_v51  ;;  %v734_v5 = vmul.f32 %v731_v61, %v403_v33  ;;  %v839_v6 = vmul.f32 %v1760_v25, %v398_v38 }
  0x39   : > { %v1798_v7 = vperm.slane %v521_v3, 0  ;;  %v632_v9 = vsel %vm1755_vm0, %v631_v63, %v630_v59  ;;  %v735_v10 = vxor.u32 %v1790_v0, %v406_v34  ;;  %v736_v11 = vadd.s32 %v733_v1, %v408_v35 }
  0x3a   : > { %vm431_vm1 = vcmp.eq.s32.totalorder %v1738_v8, %v1793_v2  ;;  %vm432_vm2 = vcmp.eq.s32.totalorder %v1743_v13, %v1793_v2  ;;  %v1807_v12 = vperm.slane %v632_v9, 0  ;;  %v1809_v18 = vperm.slane %v734_v5, 0 }
  0x3b   : > { %v464_v19 = vsel %vm431_vm1, %v1778_v55, 0.0  ;;  %v465_v20 = vsel %vm432_vm2, %v1778_v55, 0.0  ;;  %vm537_vm3 = vcmp.eq.s32.totalorder %v1738_v8, %v1798_v7  ;;  %vm538_vm4 = vcmp.eq.s32.totalorder %v1743_v13, %v1798_v7 }
  0x3c   : > { %v570_v22 = vsel %vm537_vm3, %v1780_v56, 0.0  ;;  %v571_v23 = vsel %vm538_vm4, %v1780_v56, 0.0  ;;  %vm648_vm5 = vcmp.eq.s32.totalorder %v1738_v8, %v1807_v12  ;;  %vm649_vm6 = vcmp.eq.s32.totalorder %v1743_v13, %v1807_v12 }
  0x3d   : > { %v602_v24 = vadd.f32 %v570_v22, %v464_v19  ;;  %v603_v26 = vadd.f32 %v571_v23, %v465_v20  ;;  %v681_v27 = vsel %vm648_vm5, %v1784_v60, 0.0  ;;  %v682_v30 = vsel %vm649_vm6, %v1784_v60, 0.0 }
  0x3e   : > { %v737_v31 = vand.u32 %v735_v10, %v1745_v14  ;;  %v840_v32 = vrot.slane %v358_v28, 2  ;;  %v842_v33 = vrot.slane %v361_v29, 2  ;;  %v1828_v34 = vperm.slane %v839_v6, 0 }
  0x3f   : > { %v713_v35 = vadd.f32 %v681_v27, %v602_v24  ;;  %v714_v37 = vadd.f32 %v682_v30, %v603_v26  ;;  %v944_v38 = vmul.f32 %v1760_v25, %v514_v41  ;;  %v1047_v45 = vmul.f32 %v1760_v25, %v623_v36 }
  0x40   : > { %v738_v46 = vsel %vm1755_vm0, %v737_v31, %v736_v11  ;;  %v841_v47 = vxor.u32 %v840_v32, %v1767_v39  ;;  %v843_v48 = vadd.s32 %v842_v33, %v402_v40  ;;  %v945_v49 = vxor.u32 %v840_v32, %v1770_v42 }
  0x41   : > { %v1836_v50 = vperm.slane %v738_v46, 0  ;;  %v946_v17 = vadd.s32 %v842_v33, %v516_v43  ;;  %v1838_v28 = vperm.slane %v944_v38, 0  ;;  %v1048_v29 = vxor.u32 %v840_v32, %v1773_v44 }
  0x42   : > { %v844_v51 = vand.u32 %v841_v47, %v1745_v14  ;;  %v947_v41 = vand.u32 %v945_v49, %v1745_v14  ;;  %v1049_v36 = vadd.s32 %v842_v33, %v627_v52  ;;  %v1843_v53 = vperm.slane %v1047_v45, 0 }
  0x43   : > { %vm754_vm7 = vcmp.eq.s32.totalorder %v1738_v8, %v1836_v50  ;;  %vm755_vm8 = vcmp.eq.s32.totalorder %v1743_v13, %v1836_v50  ;;  %v1050_v39 = vand.u32 %v1048_v29, %v1745_v14  ;;  %v1150_v40 = vmul.f32 %v1760_v25, %v731_v61 }
  0x44   : > { %v787_v42 = vsel %vm754_vm7, %v1809_v18, 0.0  ;;  %v788_v43 = vsel %vm755_vm8, %v1809_v18, 0.0  ;;  %v845_v44 = vsel %vm1755_vm0, %v844_v51, %v843_v48  ;;  %v948_v52 = vsel %vm1755_vm0, %v947_v41, %v946_v17 }
  0x45   : > { %v819_v54 = vadd.f32 %v787_v42, %v713_v35  ;;  %v820_v57 = vadd.f32 %v788_v43, %v714_v37  ;;  %v1857_v58 = vperm.slane %v845_v44, 0  ;;  %v1859_v59 = vperm.slane %v948_v52, 0 }
  0x46   : > { %v1051_v62 = vsel %vm1755_vm0, %v1050_v39, %v1049_v36  ;;  %v1151_v25 = vxor.u32 %v840_v32, %v1790_v0  ;;  %v1152_v61 = vadd.s32 %v842_v33, %v733_v1  ;;  %v1864_v63 = vperm.slane %v1150_v40, 0 }
  0x47   : > { %vm861_vm9 = vcmp.eq.s32.totalorder %v1738_v8, %v1857_v58  ;;  %vm862_vm10 = vcmp.eq.s32.totalorder %v1743_v13, %v1857_v58  ;;  %vm964_vm11 = vcmp.eq.s32.totalorder %v1738_v8, %v1859_v59  ;;  %vm965_vm12 = vcmp.eq.s32.totalorder %v1743_v13, %v1859_v59 }
  0x48   : > { %v894_v3 = vsel %vm861_vm9, %v1828_v34, 0.0  ;;  %v895_v5 = vsel %vm862_vm10, %v1828_v34, 0.0  ;;  %v997_v0 = vsel %vm964_vm11, %v1838_v28, 0.0  ;;  %v998_v1 = vsel %vm965_vm12, %v1838_v28, 0.0 }
  0x49   : > { %v926_v6 = vadd.f32 %v894_v3, %v819_v54  ;;  %v927_v9 = vadd.f32 %v895_v5, %v820_v57  ;;  %v1878_v10 = vperm.slane %v1051_v62, 0  ;;  %v1153_v11 = vand.u32 %v1151_v25, %v1745_v14 }
  0x4a   : > { %vm447_vm13 = vcmp.eq.s32.totalorder %v1748_v15, %v1793_v2  ;;  %vm448_vm14 = vcmp.eq.s32.totalorder %v1751_v16, %v1793_v2  ;;  %vm553_vm15 = vcmp.eq.s32.totalorder %v1748_v15, %v1798_v7  ;;  %vm554_vm1 = vcmp.eq.s32.totalorder %v1751_v16, %v1798_v7 }
  0x4b   : > { %v1029_v19 = vadd.f32 %v997_v0, %v926_v6  ;;  %v1030_v20 = vadd.f32 %v998_v1, %v927_v9  ;;  %vm1067_vm2 = vcmp.eq.s32.totalorder %v1738_v8, %v1878_v10  ;;  %vm1068_vm3 = vcmp.eq.s32.totalorder %v1743_v13, %v1878_v10 }
  0x4c   : > { %v1100_v14 = vsel %vm1067_vm2, %v1843_v53, 0.0  ;;  %v1101_v22 = vsel %vm1068_vm3, %v1843_v53, 0.0  ;;  %v1154_v23 = vsel %vm1755_vm0, %v1153_v11, %v1152_v61  ;;  %v480_v24 = vsel %vm447_vm13, %v1778_v55, 0.0 }
  0x4d   : > { %v1132_v26 = vadd.f32 %v1100_v14, %v1029_v19  ;;  %v1133_v27 = vadd.f32 %v1101_v22, %v1030_v20  ;;  %v1898_v30 = vperm.slane %v1154_v23, 0  ;;  %v481_v31 = vsel %vm448_vm14, %v1778_v55, 0.0 }
  0x4e   : > { %v586_v32 = vsel %vm553_vm15, %v1780_v56, 0.0  ;;  %v587_v33 = vsel %vm554_vm1, %v1780_v56, 0.0  ;;  %vm664_vm4 = vcmp.eq.s32.totalorder %v1748_v15, %v1807_v12  ;;  %vm665_vm5 = vcmp.eq.s32.totalorder %v1751_v16, %v1807_v12 }
  0x4f   : > { %vm1170_vm0 = vcmp.eq.s32.totalorder %v1738_v8, %v1898_v30  ;;  %vm1171_vm6 = vcmp.eq.s32.totalorder %v1743_v13, %v1898_v30  ;;  %v618_v21 = vadd.f32 %v586_v32, %v480_v24  ;;  %v619_v35 = vadd.f32 %v587_v33, %v481_v31 }
  0x50   : > { %v1203_v37 = vsel %vm1170_vm0, %v1864_v63, 0.0  ;;  %v1204_v38 = vsel %vm1171_vm6, %v1864_v63, 0.0  ;;  %v697_v45 = vsel %vm664_vm4, %v1784_v60, 0.0  ;;  %v698_v46 = vsel %vm665_vm5, %v1784_v60, 0.0 }
  0x51   : > { %v1235_v47 = vadd.f32 %v1203_v37, %v1132_v26  ;;  %v1236_v48 = vadd.f32 %v1204_v38, %v1133_v27  ;;  %v729_v49 = vadd.f32 %v697_v45, %v618_v21  ;;  %v730_v17 = vadd.f32 %v698_v46, %v619_v35 }
  0x52   : > { %vm770_vm7 = vcmp.eq.s32.totalorder %v1748_v15, %v1836_v50  ;;  %vm771_vm8 = vcmp.eq.s32.totalorder %v1751_v16, %v1836_v50  ;;  %vm877_vm9 = vcmp.eq.s32.totalorder %v1748_v15, %v1857_v58  ;;  %vm878_vm10 = vcmp.eq.s32.totalorder %v1751_v16, %v1857_v58 }
  0x53   : > { %v1261_v8 = vpack.c.bf16 %v1236_v48, %v1235_v47  ;;  %v803_v13 = vsel %vm770_vm7, %v1809_v18, 0.0  ;;  %v804_v29 = vsel %vm771_vm8, %v1809_v18, 0.0  ;;  %v910_v51 = vsel %vm877_vm9, %v1828_v34, 0.0 }
  0x54   : > { %v835_v41 = vadd.f32 %v803_v13, %v729_v49  ;;  %v836_v36 = vadd.f32 %v804_v29, %v730_v17  ;;  %v911_v39 = vsel %vm878_vm10, %v1828_v34, 0.0  ;;  %vm980_vm11 = vcmp.eq.s32.totalorder %v1748_v15, %v1859_v59 }
  0x55   : > { %1276 = vmatpush.bf16.msra.mxu0 %v1261_v8  ;;  %vm981_vm12 = vcmp.eq.s32.totalorder %v1751_v16, %v1859_v59  ;;  %v1013_v40 = vsel %vm980_vm11, %v1838_v28, 0.0  ;;  %vm1083_vm13 = vcmp.eq.s32.totalorder %v1748_v15, %v1878_v10  ;;  %vm1084_vm14 = vcmp.eq.s32.totalorder %v1751_v16, %v1878_v10 }
  0x56   : > { %v942_v42 = vadd.f32 %v910_v51, %v835_v41  ;;  %v943_v43 = vadd.f32 %v911_v39, %v836_v36  ;;  %v1014_v44 = vsel %vm981_vm12, %v1838_v28, 0.0  ;;  %v1116_v52 = vsel %vm1083_vm13, %v1843_v53, 0.0 }
  0x57   : > { %v1117_v54 = vsel %vm1084_vm14, %v1843_v53, 0.0  ;;  %vm1186_vm15 = vcmp.eq.s32.totalorder %v1748_v15, %v1898_v30  ;;  %vm1187_vm1 = vcmp.eq.s32.totalorder %v1751_v16, %v1898_v30  ;;  %v375_v57 = vadd.s32 96, %v1732_v4 }
  0x58   : > { %v1045_v62 = vadd.f32 %v1013_v40, %v942_v42  ;;  %v1046_v25 = vadd.f32 %v1014_v44, %v943_v43  ;;  %v1219_v61 = vsel %vm1186_vm15, %v1864_v63, 0.0  ;;  %v1220_v3 = vsel %vm1187_vm1, %v1864_v63, 0.0 }
  0x59   : > { %v376_v5 = vadd.s32 104, %v1732_v4  ;;  %vm429_vm2 = vcmp.eq.s32.totalorder %v375_v57, %v1793_v2  ;;  %vm535_vm3 = vcmp.eq.s32.totalorder %v375_v57, %v1798_v7  ;;  %vm646_vm4 = vcmp.eq.s32.totalorder %v375_v57, %v1807_v12 }
  0x5a   : > { %v1148_v15 = vadd.f32 %v1116_v52, %v1045_v62  ;;  %v1149_v0 = vadd.f32 %v1117_v54, %v1046_v25  ;;  %v462_v16 = vsel %vm429_vm2, %v1778_v55, 0.0  ;;  %v568_v1 = vsel %vm535_vm3, %v1780_v56, 0.0 }
  0x5b   : > { %vm430_vm5 = vcmp.eq.s32.totalorder %v376_v5, %v1793_v2  ;;  %vm536_vm0 = vcmp.eq.s32.totalorder %v376_v5, %v1798_v7  ;;  %v600_v6 = vadd.f32 %v568_v1, %v462_v16  ;;  %vm647_vm6 = vcmp.eq.s32.totalorder %v376_v5, %v1807_v12 }
  0x5c   : > { %v1251_v9 = vadd.f32 %v1219_v61, %v1148_v15  ;;  %v1252_v11 = vadd.f32 %v1220_v3, %v1149_v0  ;;  %v463_v19 = vsel %vm430_vm5, %v1778_v55, 0.0  ;;  %v569_v20 = vsel %vm536_vm0, %v1780_v56, 0.0 }
  0x5d   : > { %v601_v14 = vadd.f32 %v569_v20, %v463_v19  ;;  %v679_v22 = vsel %vm646_vm4, %v1784_v60, 0.0  ;;  %v680_v23 = vsel %vm647_vm6, %v1784_v60, 0.0  ;;  %vm752_vm7 = vcmp.eq.s32.totalorder %v375_v57, %v1836_v50 }
  0x5e   : > { %v1269_v24 = vpack.c.bf16 %v1252_v11, %v1251_v9  ;;  %v711_v26 = vadd.f32 %v679_v22, %v600_v6  ;;  %vm753_vm8 = vcmp.eq.s32.totalorder %v376_v5, %v1836_v50  ;;  %v785_v27 = vsel %vm752_vm7, %v1809_v18, 0.0 }
  0x5f   : > { %v712_v31 = vadd.f32 %v680_v23, %v601_v14  ;;  %v786_v32 = vsel %vm753_vm8, %v1809_v18, 0.0  ;;  %vm859_vm9 = vcmp.eq.s32.totalorder %v375_v57, %v1857_v58  ;;  %vm860_vm10 = vcmp.eq.s32.totalorder %v376_v5, %v1857_v58 }
  0x60   : > { %1289 = vmatpush.bf16.msra.mxu1 %v1269_v24  ;;  %v817_v33 = vadd.f32 %v785_v27, %v711_v26  ;;  %v892_v21 = vsel %vm859_vm9, %v1828_v34, 0.0  ;;  %v893_v35 = vsel %vm860_vm10, %v1828_v34, 0.0  ;;  %vm962_vm11 = vcmp.eq.s32.totalorder %v375_v57, %v1859_v59 }
  0x61   : > { %v818_v37 = vadd.f32 %v786_v32, %v712_v31  ;;  %vm963_vm12 = vcmp.eq.s32.totalorder %v376_v5, %v1859_v59  ;;  %v995_v38 = vsel %vm962_vm11, %v1838_v28, 0.0  ;;  %vm1065_vm13 = vcmp.eq.s32.totalorder %v375_v57, %v1878_v10 }
  0x62   : > { %v924_v45 = vadd.f32 %v892_v21, %v817_v33  ;;  %v996_v46 = vsel %vm963_vm12, %v1838_v28, 0.0  ;;  %vm1066_vm14 = vcmp.eq.s32.totalorder %v376_v5, %v1878_v10  ;;  %v1098_v47 = vsel %vm1065_vm13, %v1843_v53, 0.0 }
  0x63   : > { %v925_v48 = vadd.f32 %v893_v35, %v818_v37  ;;  %v1099_v49 = vsel %vm1066_vm14, %v1843_v53, 0.0  ;;  %vm1168_vm15 = vcmp.eq.s32.totalorder %v375_v57, %v1898_v30  ;;  %vm1169_vm1 = vcmp.eq.s32.totalorder %v376_v5, %v1898_v30 }
  0x64   : > { %v1027_v17 = vadd.f32 %v995_v38, %v924_v45  ;;  %v1201_v8 = vsel %vm1168_vm15, %v1864_v63, 0.0  ;;  %v1202_v13 = vsel %vm1169_vm1, %v1864_v63, 0.0  ;;  %v391_v29 = vadd.s32 224, %v1732_v4 }
  0x65   : > { %v1028_v51 = vadd.f32 %v996_v46, %v925_v48  ;;  %v392_v41 = vadd.s32 232, %v1732_v4  ;;  %v1982_v36 = vadd.s32 80, %v1732_v4  ;;  %v1985_v39 = vadd.s32 88, %v1732_v4 }
  0x66   : > { %v1130_v40 = vadd.f32 %v1098_v47, %v1027_v17  ;;  %vm445_vm2 = vcmp.eq.s32.totalorder %v391_v29, %v1793_v2  ;;  %vm551_vm3 = vcmp.eq.s32.totalorder %v391_v29, %v1798_v7  ;;  %vm662_vm4 = vcmp.eq.s32.totalorder %v391_v29, %v1807_v12 }
  0x67   : > { %v1131_v42 = vadd.f32 %v1099_v49, %v1028_v51  ;;  %vm446_vm5 = vcmp.eq.s32.totalorder %v392_v41, %v1793_v2  ;;  %v478_v43 = vsel %vm445_vm2, %v1778_v55, 0.0  ;;  %vm552_vm0 = vcmp.eq.s32.totalorder %v392_v41, %v1798_v7 }
  0x68   : > { %v1233_v44 = vadd.f32 %v1201_v8, %v1130_v40  ;;  %v479_v52 = vsel %vm446_vm5, %v1778_v55, 0.0  ;;  %v584_v54 = vsel %vm551_vm3, %v1780_v56, 0.0  ;;  %v585_v57 = vsel %vm552_vm0, %v1780_v56, 0.0 }
  0x69   : > { %v1234_v62 = vadd.f32 %v1202_v13, %v1131_v42  ;;  %v616_v25 = vadd.f32 %v584_v54, %v478_v43  ;;  %v617_v61 = vadd.f32 %v585_v57, %v479_v52  ;;  %vm663_vm6 = vcmp.eq.s32.totalorder %v392_v41, %v1807_v12 }
  0x6a   : > { %v695_v3 = vsel %vm662_vm4, %v1784_v60, 0.0  ;;  %v696_v5 = vsel %vm663_vm6, %v1784_v60, 0.0  ;;  %vm768_vm7 = vcmp.eq.s32.totalorder %v391_v29, %v1836_v50  ;;  %vm769_vm8 = vcmp.eq.s32.totalorder %v392_v41, %v1836_v50 }
  0x6b   : > { %v1260_v15 = vpack.c.bf16 %v1234_v62, %v1233_v44  ;;  %v727_v0 = vadd.f32 %v695_v3, %v616_v25  ;;  %v728_v16 = vadd.f32 %v696_v5, %v617_v61  ;;  %v801_v1 = vsel %vm768_vm7, %v1809_v18, 0.0 }
  0x6c   : > { %v802_v6 = vsel %vm769_vm8, %v1809_v18, 0.0  ;;  %vm875_vm9 = vcmp.eq.s32.totalorder %v391_v29, %v1857_v58  ;;  %vm876_vm10 = vcmp.eq.s32.totalorder %v392_v41, %v1857_v58  ;;  %vm978_vm11 = vcmp.eq.s32.totalorder %v391_v29, %v1859_v59 }
  0x6d   : > { %1277 = vmatpush.bf16.msra.mxu0 %v1260_v15  ;;  %v833_v9 = vadd.f32 %v801_v1, %v727_v0  ;;  %v834_v11 = vadd.f32 %v802_v6, %v728_v16  ;;  %v908_v19 = vsel %vm875_vm9, %v1828_v34, 0.0  ;;  %v909_v20 = vsel %vm876_vm10, %v1828_v34, 0.0 }
  0x6e   : > { %vm979_vm12 = vcmp.eq.s32.totalorder %v392_v41, %v1859_v59  ;;  %v1011_v14 = vsel %vm978_vm11, %v1838_v28, 0.0  ;;  %vm1081_vm13 = vcmp.eq.s32.totalorder %v391_v29, %v1878_v10  ;;  %vm1082_vm14 = vcmp.eq.s32.totalorder %v392_v41, %v1878_v10 }
  0x6f   : > { %v940_v22 = vadd.f32 %v908_v19, %v833_v9  ;;  %v941_v23 = vadd.f32 %v909_v20, %v834_v11  ;;  %v1012_v24 = vsel %vm979_vm12, %v1838_v28, 0.0  ;;  %v1114_v26 = vsel %vm1081_vm13, %v1843_v53, 0.0 }
  0x70   : > { %v1115_v27 = vsel %vm1082_vm14, %v1843_v53, 0.0  ;;  %vm1184_vm15 = vcmp.eq.s32.totalorder %v391_v29, %v1898_v30  ;;  %vm1185_vm1 = vcmp.eq.s32.totalorder %v392_v41, %v1898_v30  ;;  %vm427_vm2 = vcmp.eq.s32.totalorder %v1982_v36, %v1793_v2 }
  0x71   : > { %v1043_v31 = vadd.f32 %v1011_v14, %v940_v22  ;;  %v1044_v32 = vadd.f32 %v1012_v24, %v941_v23  ;;  %v1217_v33 = vsel %vm1184_vm15, %v1864_v63, 0.0  ;;  %v1218_v21 = vsel %vm1185_vm1, %v1864_v63, 0.0 }
  0x72   : > { %vm428_vm3 = vcmp.eq.s32.totalorder %v1985_v39, %v1793_v2  ;;  %v460_v35 = vsel %vm427_vm2, %v1778_v55, 0.0  ;;  %vm533_vm4 = vcmp.eq.s32.totalorder %v1982_v36, %v1798_v7  ;;  %vm534_vm5 = vcmp.eq.s32.totalorder %v1985_v39, %v1798_v7 }
  0x73   : > { %v1146_v37 = vadd.f32 %v1114_v26, %v1043_v31  ;;  %v1147_v38 = vadd.f32 %v1115_v27, %v1044_v32  ;;  %v461_v45 = vsel %vm428_vm3, %v1778_v55, 0.0  ;;  %v566_v46 = vsel %vm533_vm4, %v1780_v56, 0.0 }
  0x74   : > { %v567_v47 = vsel %vm534_vm5, %v1780_v56, 0.0  ;;  %v598_v48 = vadd.f32 %v566_v46, %v460_v35  ;;  %vm644_vm0 = vcmp.eq.s32.totalorder %v1982_v36, %v1807_v12  ;;  %vm645_vm6 = vcmp.eq.s32.totalorder %v1985_v39, %v1807_v12 }
  0x75   : > { %v1249_v49 = vadd.f32 %v1217_v33, %v1146_v37  ;;  %v1250_v17 = vadd.f32 %v1218_v21, %v1147_v38  ;;  %v599_v8 = vadd.f32 %v567_v47, %v461_v45  ;;  %v677_v13 = vsel %vm644_vm0, %v1784_v60, 0.0 }
  0x76   : > { %v678_v29 = vsel %vm645_vm6, %v1784_v60, 0.0  ;;  %v709_v51 = vadd.f32 %v677_v13, %v598_v48  ;;  %vm750_vm7 = vcmp.eq.s32.totalorder %v1982_v36, %v1836_v50  ;;  %vm751_vm8 = vcmp.eq.s32.totalorder %v1985_v39, %v1836_v50 }
  0x77   : > { %v1268_v41 = vpack.c.bf16 %v1250_v17, %v1249_v49  ;;  %v710_v40 = vadd.f32 %v678_v29, %v599_v8  ;;  %v783_v42 = vsel %vm750_vm7, %v1809_v18, 0.0  ;;  %v784_v43 = vsel %vm751_vm8, %v1809_v18, 0.0 }
  0x78   : > { %v815_v44 = vadd.f32 %v783_v42, %v709_v51  ;;  %vm857_vm9 = vcmp.eq.s32.totalorder %v1982_v36, %v1857_v58  ;;  %vm858_vm10 = vcmp.eq.s32.totalorder %v1985_v39, %v1857_v58  ;;  %vm960_vm11 = vcmp.eq.s32.totalorder %v1982_v36, %v1859_v59 }
  0x79   : > { %1290 = vmatpush.bf16.msra.mxu1 %v1268_v41  ;;  %v816_v52 = vadd.f32 %v784_v43, %v710_v40  ;;  %v890_v54 = vsel %vm857_vm9, %v1828_v34, 0.0  ;;  %v891_v57 = vsel %vm858_vm10, %v1828_v34, 0.0  ;;  %vm961_vm12 = vcmp.eq.s32.totalorder %v1985_v39, %v1859_v59 }
  0x7a   : > { %v922_v62 = vadd.f32 %v890_v54, %v815_v44  ;;  %v993_v25 = vsel %vm960_vm11, %v1838_v28, 0.0  ;;  %v994_v61 = vsel %vm961_vm12, %v1838_v28, 0.0  ;;  %vm1063_vm13 = vcmp.eq.s32.totalorder %v1982_v36, %v1878_v10 }
  0x7b   : > { %v923_v3 = vadd.f32 %v891_v57, %v816_v52  ;;  %vm1064_vm14 = vcmp.eq.s32.totalorder %v1985_v39, %v1878_v10  ;;  %v1096_v5 = vsel %vm1063_vm13, %v1843_v53, 0.0  ;;  %vm1166_vm15 = vcmp.eq.s32.totalorder %v1982_v36, %v1898_v30 }
  0x7c   : > { %v1025_v15 = vadd.f32 %v993_v25, %v922_v62  ;;  %v1097_v0 = vsel %vm1064_vm14, %v1843_v53, 0.0  ;;  %vm1167_vm1 = vcmp.eq.s32.totalorder %v1985_v39, %v1898_v30  ;;  %v1199_v16 = vsel %vm1166_vm15, %v1864_v63, 0.0 }
  0x7d   : > { %v1026_v1 = vadd.f32 %v994_v61, %v923_v3  ;;  %v1200_v6 = vsel %vm1167_vm1, %v1864_v63, 0.0  ;;  %v389_v9 = vadd.s32 208, %v1732_v4  ;;  %v390_v11 = vadd.s32 216, %v1732_v4 }
  0x7e   : > { %v1128_v19 = vadd.f32 %v1096_v5, %v1025_v15  ;;  %v2070_v20 = vadd.s32 64, %v1732_v4  ;;  %v2073_v36 = vadd.s32 72, %v1732_v4  ;;  %v2076_v14 = vadd.s32 192, %v1732_v4 }
  0x7f   : > { %v1129_v39 = vadd.f32 %v1097_v0, %v1026_v1  ;;  %vm443_vm2 = vcmp.eq.s32.totalorder %v389_v9, %v1793_v2  ;;  %vm444_vm3 = vcmp.eq.s32.totalorder %v390_v11, %v1793_v2  ;;  %vm549_vm4 = vcmp.eq.s32.totalorder %v389_v9, %v1798_v7 }
  0x80   : > { %v1231_v22 = vadd.f32 %v1199_v16, %v1128_v19  ;;  %v476_v23 = vsel %vm443_vm2, %v1778_v55, 0.0  ;;  %v477_v24 = vsel %vm444_vm3, %v1778_v55, 0.0  ;;  %vm550_vm5 = vcmp.eq.s32.totalorder %v390_v11, %v1798_v7 }
  0x81   : > { %v1232_v26 = vadd.f32 %v1200_v6, %v1129_v39  ;;  %v582_v27 = vsel %vm549_vm4, %v1780_v56, 0.0  ;;  %v583_v31 = vsel %vm550_vm5, %v1780_v56, 0.0  ;;  %vm660_vm0 = vcmp.eq.s32.totalorder %v389_v9, %v1807_v12 }
  0x82   : > { %v614_v32 = vadd.f32 %v582_v27, %v476_v23  ;;  %v615_v33 = vadd.f32 %v583_v31, %v477_v24  ;;  %vm661_vm6 = vcmp.eq.s32.totalorder %v390_v11, %v1807_v12  ;;  %v693_v21 = vsel %vm660_vm0, %v1784_v60, 0.0 }
  0x83   : > { %v1259_v35 = vpack.c.bf16 %v1232_v26, %v1231_v22  ;;  %v694_v37 = vsel %vm661_vm6, %v1784_v60, 0.0  ;;  %vm766_vm7 = vcmp.eq.s32.totalorder %v389_v9, %v1836_v50  ;;  %vm767_vm8 = vcmp.eq.s32.totalorder %v390_v11, %v1836_v50 }
  0x84   : > { %v725_v38 = vadd.f32 %v693_v21, %v614_v32  ;;  %v726_v45 = vadd.f32 %v694_v37, %v615_v33  ;;  %v799_v46 = vsel %vm766_vm7, %v1809_v18, 0.0  ;;  %v800_v47 = vsel %vm767_vm8, %v1809_v18, 0.0 }
  0x85   : > { %1278 = vmatpush.bf16.msra.mxu0 %v1259_v35  ;;  %vm873_vm9 = vcmp.eq.s32.totalorder %v389_v9, %v1857_v58  ;;  %vm874_vm10 = vcmp.eq.s32.totalorder %v390_v11, %v1857_v58  ;;  %vm976_vm11 = vcmp.eq.s32.totalorder %v389_v9, %v1859_v59  ;;  %vm977_vm12 = vcmp.eq.s32.totalorder %v390_v11, %v1859_v59 }
  0x86   : > { %v831_v48 = vadd.f32 %v799_v46, %v725_v38  ;;  %v832_v49 = vadd.f32 %v800_v47, %v726_v45  ;;  %v906_v17 = vsel %vm873_vm9, %v1828_v34, 0.0  ;;  %v907_v8 = vsel %vm874_vm10, %v1828_v34, 0.0 }
  0x87   : > { %v1009_v13 = vsel %vm976_vm11, %v1838_v28, 0.0  ;;  %v1010_v29 = vsel %vm977_vm12, %v1838_v28, 0.0  ;;  %vm1079_vm13 = vcmp.eq.s32.totalorder %v389_v9, %v1878_v10  ;;  %vm1080_vm14 = vcmp.eq.s32.totalorder %v390_v11, %v1878_v10 }
  0x88   : > { %v938_v51 = vadd.f32 %v906_v17, %v831_v48  ;;  %v939_v41 = vadd.f32 %v907_v8, %v832_v49  ;;  %v1112_v40 = vsel %vm1079_vm13, %v1843_v53, 0.0  ;;  %v1113_v42 = vsel %vm1080_vm14, %v1843_v53, 0.0 }
  0x89   : > { %vm1182_vm15 = vcmp.eq.s32.totalorder %v389_v9, %v1898_v30  ;;  %vm1183_vm1 = vcmp.eq.s32.totalorder %v390_v11, %v1898_v30  ;;  %vm425_vm2 = vcmp.eq.s32.totalorder %v2070_v20, %v1793_v2  ;;  %vm426_vm3 = vcmp.eq.s32.totalorder %v2073_v36, %v1793_v2 }
  0x8a   : > { %v1041_v43 = vadd.f32 %v1009_v13, %v938_v51  ;;  %v1042_v44 = vadd.f32 %v1010_v29, %v939_v41  ;;  %v1215_v52 = vsel %vm1182_vm15, %v1864_v63, 0.0  ;;  %v1216_v54 = vsel %vm1183_vm1, %v1864_v63, 0.0 }
  0x8b   : > { %v458_v57 = vsel %vm425_vm2, %v1778_v55, 0.0  ;;  %v459_v62 = vsel %vm426_vm3, %v1778_v55, 0.0  ;;  %vm531_vm4 = vcmp.eq.s32.totalorder %v2070_v20, %v1798_v7  ;;  %vm532_vm5 = vcmp.eq.s32.totalorder %v2073_v36, %v1798_v7 }
  0x8c   : > { %v1144_v25 = vadd.f32 %v1112_v40, %v1041_v43  ;;  %v1145_v61 = vadd.f32 %v1113_v42, %v1042_v44  ;;  %v564_v3 = vsel %vm531_vm4, %v1780_v56, 0.0  ;;  %v565_v5 = vsel %vm532_vm5, %v1780_v56, 0.0 }
  0x8d   : > { %v596_v15 = vadd.f32 %v564_v3, %v458_v57  ;;  %v597_v0 = vadd.f32 %v565_v5, %v459_v62  ;;  %vm642_vm0 = vcmp.eq.s32.totalorder %v2070_v20, %v1807_v12  ;;  %vm643_vm6 = vcmp.eq.s32.totalorder %v2073_v36, %v1807_v12 }
  0x8e   : > { %v1247_v16 = vadd.f32 %v1215_v52, %v1144_v25  ;;  %v1248_v1 = vadd.f32 %v1216_v54, %v1145_v61  ;;  %v675_v6 = vsel %vm642_vm0, %v1784_v60, 0.0  ;;  %v676_v9 = vsel %vm643_vm6, %v1784_v60, 0.0 }
  0x8f   : > { %v707_v11 = vadd.f32 %v675_v6, %v596_v15  ;;  %v708_v19 = vadd.f32 %v676_v9, %v597_v0  ;;  %vm748_vm7 = vcmp.eq.s32.totalorder %v2070_v20, %v1836_v50  ;;  %vm749_vm8 = vcmp.eq.s32.totalorder %v2073_v36, %v1836_v50 }
  0x90   : > { %v1267_v39 = vpack.c.bf16 %v1248_v1, %v1247_v16  ;;  %v781_v22 = vsel %vm748_vm7, %v1809_v18, 0.0  ;;  %v782_v23 = vsel %vm749_vm8, %v1809_v18, 0.0  ;;  %vm855_vm9 = vcmp.eq.s32.totalorder %v2070_v20, %v1857_v58 }
  0x91   : > { %v813_v24 = vadd.f32 %v781_v22, %v707_v11  ;;  %v814_v26 = vadd.f32 %v782_v23, %v708_v19  ;;  %vm856_vm10 = vcmp.eq.s32.totalorder %v2073_v36, %v1857_v58  ;;  %v888_v27 = vsel %vm855_vm9, %v1828_v34, 0.0 }
  0x92   : > { %1291 = vmatpush.bf16.msra.mxu1 %v1267_v39  ;;  %v889_v31 = vsel %vm856_vm10, %v1828_v34, 0.0  ;;  %vm958_vm11 = vcmp.eq.s32.totalorder %v2070_v20, %v1859_v59  ;;  %vm959_vm12 = vcmp.eq.s32.totalorder %v2073_v36, %v1859_v59  ;;  %vm1061_vm13 = vcmp.eq.s32.totalorder %v2070_v20, %v1878_v10 }
  0x93   : > { %v920_v32 = vadd.f32 %v888_v27, %v813_v24  ;;  %v921_v33 = vadd.f32 %v889_v31, %v814_v26  ;;  %v991_v21 = vsel %vm958_vm11, %v1838_v28, 0.0  ;;  %v992_v35 = vsel %vm959_vm12, %v1838_v28, 0.0 }
  0x94   : > { %vm1062_vm14 = vcmp.eq.s32.totalorder %v2073_v36, %v1878_v10  ;;  %v1094_v37 = vsel %vm1061_vm13, %v1843_v53, 0.0  ;;  %vm1164_vm15 = vcmp.eq.s32.totalorder %v2070_v20, %v1898_v30  ;;  %vm1165_vm1 = vcmp.eq.s32.totalorder %v2073_v36, %v1898_v30 }
  0x95   : > { %v1023_v38 = vadd.f32 %v991_v21, %v920_v32  ;;  %v1024_v45 = vadd.f32 %v992_v35, %v921_v33  ;;  %v1095_v46 = vsel %vm1062_vm14, %v1843_v53, 0.0  ;;  %v1197_v47 = vsel %vm1164_vm15, %v1864_v63, 0.0 }
  0x96   : > { %v1198_v48 = vsel %vm1165_vm1, %v1864_v63, 0.0  ;;  %v388_v49 = vadd.s32 200, %v1732_v4  ;;  %vm441_vm2 = vcmp.eq.s32.totalorder %v2076_v14, %v1793_v2  ;;  %vm547_vm3 = vcmp.eq.s32.totalorder %v2076_v14, %v1798_v7 }
  0x97   : > { %v1126_v20 = vadd.f32 %v1094_v37, %v1023_v38  ;;  %v1127_v17 = vadd.f32 %v1095_v46, %v1024_v45  ;;  %v474_v36 = vsel %vm441_vm2, %v1778_v55, 0.0  ;;  %v580_v8 = vsel %vm547_vm3, %v1780_v56, 0.0 }
  0x98   : > { %vm442_vm4 = vcmp.eq.s32.totalorder %v388_v49, %v1793_v2  ;;  %vm548_vm5 = vcmp.eq.s32.totalorder %v388_v49, %v1798_v7  ;;  %v612_v13 = vadd.f32 %v580_v8, %v474_v36  ;;  %vm658_vm0 = vcmp.eq.s32.totalorder %v2076_v14, %v1807_v12 }
  0x99   : > { %v1229_v29 = vadd.f32 %v1197_v47, %v1126_v20  ;;  %v1230_v51 = vadd.f32 %v1198_v48, %v1127_v17  ;;  %v475_v41 = vsel %vm442_vm4, %v1778_v55, 0.0  ;;  %v581_v40 = vsel %vm548_vm5, %v1780_v56, 0.0 }
  0x9a   : > { %v613_v42 = vadd.f32 %v581_v40, %v475_v41  ;;  %vm659_vm6 = vcmp.eq.s32.totalorder %v388_v49, %v1807_v12  ;;  %v691_v43 = vsel %vm658_vm0, %v1784_v60, 0.0  ;;  %vm764_vm7 = vcmp.eq.s32.totalorder %v2076_v14, %v1836_v50 }
  0x9b   : > { %v1258_v44 = vpack.c.bf16 %v1230_v51, %v1229_v29  ;;  %v692_v52 = vsel %vm659_vm6, %v1784_v60, 0.0  ;;  %v723_v54 = vadd.f32 %v691_v43, %v612_v13  ;;  %vm765_vm8 = vcmp.eq.s32.totalorder %v388_v49, %v1836_v50 }
  0x9c   : > { %v724_v57 = vadd.f32 %v692_v52, %v613_v42  ;;  %v797_v62 = vsel %vm764_vm7, %v1809_v18, 0.0  ;;  %v798_v25 = vsel %vm765_vm8, %v1809_v18, 0.0  ;;  %vm871_vm9 = vcmp.eq.s32.totalorder %v2076_v14, %v1857_v58 }
  0x9d   : > { %1279 = vmatpush.bf16.msra.mxu0 %v1258_v44  ;;  %v829_v61 = vadd.f32 %v797_v62, %v723_v54  ;;  %vm872_vm10 = vcmp.eq.s32.totalorder %v388_v49, %v1857_v58  ;;  %v904_v3 = vsel %vm871_vm9, %v1828_v34, 0.0  ;;  %vm974_vm11 = vcmp.eq.s32.totalorder %v2076_v14, %v1859_v59 }
  0x9e   : > { %v830_v5 = vadd.f32 %v798_v25, %v724_v57  ;;  %v905_v15 = vsel %vm872_vm10, %v1828_v34, 0.0  ;;  %vm975_vm12 = vcmp.eq.s32.totalorder %v388_v49, %v1859_v59  ;;  %v1007_v0 = vsel %vm974_vm11, %v1838_v28, 0.0 }
  0x9f   : > { %v936_v16 = vadd.f32 %v904_v3, %v829_v61  ;;  %v1008_v1 = vsel %vm975_vm12, %v1838_v28, 0.0  ;;  %vm1077_vm13 = vcmp.eq.s32.totalorder %v2076_v14, %v1878_v10  ;;  %vm1078_vm14 = vcmp.eq.s32.totalorder %v388_v49, %v1878_v10 }
  0xa0   : > { %v937_v6 = vadd.f32 %v905_v15, %v830_v5  ;;  %v1110_v9 = vsel %vm1077_vm13, %v1843_v53, 0.0  ;;  %v1111_v11 = vsel %vm1078_vm14, %v1843_v53, 0.0  ;;  %vm1180_vm15 = vcmp.eq.s32.totalorder %v2076_v14, %v1898_v30 }
  0xa1   : > { %v1039_v19 = vadd.f32 %v1007_v0, %v936_v16  ;;  %vm1181_vm1 = vcmp.eq.s32.totalorder %v388_v49, %v1898_v30  ;;  %v1213_v39 = vsel %vm1180_vm15, %v1864_v63, 0.0  ;;  %v369_v22 = vadd.s32 48, %v1732_v4 }
  0xa2   : > { %v1040_v23 = vadd.f32 %v1008_v1, %v937_v6  ;;  %v1214_v24 = vsel %vm1181_vm1, %v1864_v63, 0.0  ;;  %v370_v26 = vadd.s32 56, %v1732_v4  ;;  %v2202_v27 = vadd.s32 176, %v1732_v4 }
  0xa3   : > { %v1142_v31 = vadd.f32 %v1110_v9, %v1039_v19  ;;  %vm423_vm2 = vcmp.eq.s32.totalorder %v369_v22, %v1793_v2  ;;  %vm529_vm3 = vcmp.eq.s32.totalorder %v369_v22, %v1798_v7  ;;  %vm640_vm4 = vcmp.eq.s32.totalorder %v369_v22, %v1807_v12 }
  0xa4   : > { %v1143_v14 = vadd.f32 %v1111_v11, %v1040_v23  ;;  %vm424_vm5 = vcmp.eq.s32.totalorder %v370_v26, %v1793_v2  ;;  %v456_v32 = vsel %vm423_vm2, %v1778_v55, 0.0  ;;  %vm530_vm0 = vcmp.eq.s32.totalorder %v370_v26, %v1798_v7 }
  0xa5   : > { %v1245_v33 = vadd.f32 %v1213_v39, %v1142_v31  ;;  %v457_v21 = vsel %vm424_vm5, %v1778_v55, 0.0  ;;  %v562_v35 = vsel %vm529_vm3, %v1780_v56, 0.0  ;;  %v563_v37 = vsel %vm530_vm0, %v1780_v56, 0.0 }
  0xa6   : > { %v1246_v38 = vadd.f32 %v1214_v24, %v1143_v14  ;;  %v594_v45 = vadd.f32 %v562_v35, %v456_v32  ;;  %v595_v46 = vadd.f32 %v563_v37, %v457_v21  ;;  %vm641_vm6 = vcmp.eq.s32.totalorder %v370_v26, %v1807_v12 }
  0xa7   : > { %v673_v47 = vsel %vm640_vm4, %v1784_v60, 0.0  ;;  %v674_v48 = vsel %vm641_vm6, %v1784_v60, 0.0  ;;  %vm746_vm7 = vcmp.eq.s32.totalorder %v369_v22, %v1836_v50  ;;  %vm747_vm8 = vcmp.eq.s32.totalorder %v370_v26, %v1836_v50 }
  0xa8   : > { %v1266_v49 = vpack.c.bf16 %v1246_v38, %v1245_v33  ;;  %v705_v20 = vadd.f32 %v673_v47, %v594_v45  ;;  %v706_v17 = vadd.f32 %v674_v48, %v595_v46  ;;  %v779_v36 = vsel %vm746_vm7, %v1809_v18, 0.0 }
  0xa9   : > { %v780_v8 = vsel %vm747_vm8, %v1809_v18, 0.0  ;;  %vm853_vm9 = vcmp.eq.s32.totalorder %v369_v22, %v1857_v58  ;;  %vm854_vm10 = vcmp.eq.s32.totalorder %v370_v26, %v1857_v58  ;;  %vm956_vm11 = vcmp.eq.s32.totalorder %v369_v22, %v1859_v59 }
  0xaa   : > { %1292 = vmatpush.bf16.msra.mxu1 %v1266_v49  ;;  %v811_v13 = vadd.f32 %v779_v36, %v705_v20  ;;  %v812_v29 = vadd.f32 %v780_v8, %v706_v17  ;;  %v886_v51 = vsel %vm853_vm9, %v1828_v34, 0.0  ;;  %v887_v41 = vsel %vm854_vm10, %v1828_v34, 0.0 }
  0xab   : > { %vm957_vm12 = vcmp.eq.s32.totalorder %v370_v26, %v1859_v59  ;;  %v989_v40 = vsel %vm956_vm11, %v1838_v28, 0.0  ;;  %vm1059_vm13 = vcmp.eq.s32.totalorder %v369_v22, %v1878_v10  ;;  %vm1060_vm14 = vcmp.eq.s32.totalorder %v370_v26, %v1878_v10 }
  0xac   : > { %v918_v42 = vadd.f32 %v886_v51, %v811_v13  ;;  %v919_v43 = vadd.f32 %v887_v41, %v812_v29  ;;  %v990_v44 = vsel %vm957_vm12, %v1838_v28, 0.0  ;;  %v1092_v52 = vsel %vm1059_vm13, %v1843_v53, 0.0 }
  0xad   : > { %v1093_v54 = vsel %vm1060_vm14, %v1843_v53, 0.0  ;;  %vm1162_vm15 = vcmp.eq.s32.totalorder %v369_v22, %v1898_v30  ;;  %vm1163_vm1 = vcmp.eq.s32.totalorder %v370_v26, %v1898_v30  ;;  %v386_v57 = vadd.s32 184, %v1732_v4 }
  0xae   : > { %v1021_v62 = vadd.f32 %v989_v40, %v918_v42  ;;  %v1022_v25 = vadd.f32 %v990_v44, %v919_v43  ;;  %v1195_v61 = vsel %vm1162_vm15, %v1864_v63, 0.0  ;;  %v1196_v3 = vsel %vm1163_vm1, %v1864_v63, 0.0 }
  0xaf   : > { %vm439_vm2 = vcmp.eq.s32.totalorder %v2202_v27, %v1793_v2  ;;  %vm440_vm3 = vcmp.eq.s32.totalorder %v386_v57, %v1793_v2  ;;  %vm545_vm4 = vcmp.eq.s32.totalorder %v2202_v27, %v1798_v7  ;;  %vm546_vm5 = vcmp.eq.s32.totalorder %v386_v57, %v1798_v7 }
  0xb0   : > { %v1124_v5 = vadd.f32 %v1092_v52, %v1021_v62  ;;  %v1125_v15 = vadd.f32 %v1093_v54, %v1022_v25  ;;  %v472_v0 = vsel %vm439_vm2, %v1778_v55, 0.0  ;;  %v473_v16 = vsel %vm440_vm3, %v1778_v55, 0.0 }
  0xb1   : > { %v578_v1 = vsel %vm545_vm4, %v1780_v56, 0.0  ;;  %v579_v6 = vsel %vm546_vm5, %v1780_v56, 0.0  ;;  %vm656_vm0 = vcmp.eq.s32.totalorder %v2202_v27, %v1807_v12  ;;  %vm657_vm6 = vcmp.eq.s32.totalorder %v386_v57, %v1807_v12 }
  0xb2   : > { %v1227_v9 = vadd.f32 %v1195_v61, %v1124_v5  ;;  %v1228_v11 = vadd.f32 %v1196_v3, %v1125_v15  ;;  %v610_v19 = vadd.f32 %v578_v1, %v472_v0  ;;  %v611_v39 = vadd.f32 %v579_v6, %v473_v16 }
  0xb3   : > { %v689_v22 = vsel %vm656_vm0, %v1784_v60, 0.0  ;;  %v690_v23 = vsel %vm657_vm6, %v1784_v60, 0.0  ;;  %vm762_vm7 = vcmp.eq.s32.totalorder %v2202_v27, %v1836_v50  ;;  %vm763_vm8 = vcmp.eq.s32.totalorder %v386_v57, %v1836_v50 }
  0xb4   : > { %v1257_v24 = vpack.c.bf16 %v1228_v11, %v1227_v9  ;;  %v721_v26 = vadd.f32 %v689_v22, %v610_v19  ;;  %v722_v31 = vadd.f32 %v690_v23, %v611_v39  ;;  %v795_v14 = vsel %vm762_vm7, %v1809_v18, 0.0 }
  0xb5   : > { %v796_v32 = vsel %vm763_vm8, %v1809_v18, 0.0  ;;  %vm869_vm9 = vcmp.eq.s32.totalorder %v2202_v27, %v1857_v58  ;;  %vm870_vm10 = vcmp.eq.s32.totalorder %v386_v57, %v1857_v58  ;;  %vm972_vm11 = vcmp.eq.s32.totalorder %v2202_v27, %v1859_v59 }
  0xb6   : > { %1280 = vmatpush.bf16.msra.mxu0 %v1257_v24  ;;  %v827_v33 = vadd.f32 %v795_v14, %v721_v26  ;;  %v828_v21 = vadd.f32 %v796_v32, %v722_v31  ;;  %v902_v35 = vsel %vm869_vm9, %v1828_v34, 0.0  ;;  %v903_v37 = vsel %vm870_vm10, %v1828_v34, 0.0 }
  0xb7   : > { %vm973_vm12 = vcmp.eq.s32.totalorder %v386_v57, %v1859_v59  ;;  %v1005_v38 = vsel %vm972_vm11, %v1838_v28, 0.0  ;;  %vm1075_vm13 = vcmp.eq.s32.totalorder %v2202_v27, %v1878_v10  ;;  %vm1076_vm14 = vcmp.eq.s32.totalorder %v386_v57, %v1878_v10 }
  0xb8   : > { %v934_v45 = vadd.f32 %v902_v35, %v827_v33  ;;  %v935_v46 = vadd.f32 %v903_v37, %v828_v21  ;;  %v1006_v47 = vsel %vm973_vm12, %v1838_v28, 0.0  ;;  %v1108_v48 = vsel %vm1075_vm13, %v1843_v53, 0.0 }
  0xb9   : > { %v1109_v49 = vsel %vm1076_vm14, %v1843_v53, 0.0  ;;  %vm1178_vm15 = vcmp.eq.s32.totalorder %v2202_v27, %v1898_v30  ;;  %vm1179_vm1 = vcmp.eq.s32.totalorder %v386_v57, %v1898_v30  ;;  %v367_v20 = vadd.s32 32, %v1732_v4 }
  0xba   : > { %v1037_v17 = vadd.f32 %v1005_v38, %v934_v45  ;;  %v1038_v36 = vadd.f32 %v1006_v47, %v935_v46  ;;  %v1211_v8 = vsel %vm1178_vm15, %v1864_v63, 0.0  ;;  %v1212_v13 = vsel %vm1179_vm1, %v1864_v63, 0.0 }
  0xbb   : > { %v368_v29 = vadd.s32 40, %v1732_v4  ;;  %vm421_vm2 = vcmp.eq.s32.totalorder %v367_v20, %v1793_v2  ;;  %vm527_vm3 = vcmp.eq.s32.totalorder %v367_v20, %v1798_v7  ;;  %vm638_vm4 = vcmp.eq.s32.totalorder %v367_v20, %v1807_v12 }
  0xbc   : > { %v1140_v51 = vadd.f32 %v1108_v48, %v1037_v17  ;;  %v1141_v27 = vadd.f32 %v1109_v49, %v1038_v36  ;;  %v454_v41 = vsel %vm421_vm2, %v1778_v55, 0.0  ;;  %v560_v40 = vsel %vm527_vm3, %v1780_v56, 0.0 }
  0xbd   : > { %vm422_vm5 = vcmp.eq.s32.totalorder %v368_v29, %v1793_v2  ;;  %vm528_vm0 = vcmp.eq.s32.totalorder %v368_v29, %v1798_v7  ;;  %v592_v42 = vadd.f32 %v560_v40, %v454_v41  ;;  %vm639_vm6 = vcmp.eq.s32.totalorder %v368_v29, %v1807_v12 }
  0xbe   : > { %v1243_v43 = vadd.f32 %v1211_v8, %v1140_v51  ;;  %v1244_v44 = vadd.f32 %v1212_v13, %v1141_v27  ;;  %v455_v52 = vsel %vm422_vm5, %v1778_v55, 0.0  ;;  %v561_v54 = vsel %vm528_vm0, %v1780_v56, 0.0 }
  0xbf   : > { %v593_v57 = vadd.f32 %v561_v54, %v455_v52  ;;  %v671_v62 = vsel %vm638_vm4, %v1784_v60, 0.0  ;;  %v672_v25 = vsel %vm639_vm6, %v1784_v60, 0.0  ;;  %vm744_vm7 = vcmp.eq.s32.totalorder %v367_v20, %v1836_v50 }
  0xc0   : > { %v1265_v61 = vpack.c.bf16 %v1244_v44, %v1243_v43  ;;  %v703_v3 = vadd.f32 %v671_v62, %v592_v42  ;;  %vm745_vm8 = vcmp.eq.s32.totalorder %v368_v29, %v1836_v50  ;;  %v777_v5 = vsel %vm744_vm7, %v1809_v18, 0.0 }
  0xc1   : > { %v704_v15 = vadd.f32 %v672_v25, %v593_v57  ;;  %v778_v0 = vsel %vm745_vm8, %v1809_v18, 0.0  ;;  %vm851_vm9 = vcmp.eq.s32.totalorder %v367_v20, %v1857_v58  ;;  %vm852_vm10 = vcmp.eq.s32.totalorder %v368_v29, %v1857_v58 }
  0xc2   : > { %1293 = vmatpush.bf16.msra.mxu1 %v1265_v61  ;;  %v809_v16 = vadd.f32 %v777_v5, %v703_v3  ;;  %v884_v1 = vsel %vm851_vm9, %v1828_v34, 0.0  ;;  %v885_v6 = vsel %vm852_vm10, %v1828_v34, 0.0  ;;  %vm954_vm11 = vcmp.eq.s32.totalorder %v367_v20, %v1859_v59 }
  0xc3   : > { %v810_v9 = vadd.f32 %v778_v0, %v704_v15  ;;  %vm955_vm12 = vcmp.eq.s32.totalorder %v368_v29, %v1859_v59  ;;  %v987_v11 = vsel %vm954_vm11, %v1838_v28, 0.0  ;;  %vm1057_vm13 = vcmp.eq.s32.totalorder %v367_v20, %v1878_v10 }
  0xc4   : > { %v916_v19 = vadd.f32 %v884_v1, %v809_v16  ;;  %v988_v39 = vsel %vm955_vm12, %v1838_v28, 0.0  ;;  %vm1058_vm14 = vcmp.eq.s32.totalorder %v368_v29, %v1878_v10  ;;  %v1090_v22 = vsel %vm1057_vm13, %v1843_v53, 0.0 }
  0xc5   : > { %v917_v23 = vadd.f32 %v885_v6, %v810_v9  ;;  %v1091_v24 = vsel %vm1058_vm14, %v1843_v53, 0.0  ;;  %vm1160_vm15 = vcmp.eq.s32.totalorder %v367_v20, %v1898_v30  ;;  %vm1161_vm1 = vcmp.eq.s32.totalorder %v368_v29, %v1898_v30 }
  0xc6   : > { %v1019_v26 = vadd.f32 %v987_v11, %v916_v19  ;;  %v1193_v31 = vsel %vm1160_vm15, %v1864_v63, 0.0  ;;  %v1194_v14 = vsel %vm1161_vm1, %v1864_v63, 0.0  ;;  %v383_v32 = vadd.s32 160, %v1732_v4 }
  0xc7   : > { %v1020_v33 = vadd.f32 %v988_v39, %v917_v23  ;;  %v384_v21 = vadd.s32 168, %v1732_v4  ;;  %v2314_v35 = vadd.s32 16, %v1732_v4  ;;  %v2317_v37 = vadd.s32 24, %v1732_v4 }
  0xc8   : > { %v1122_v38 = vadd.f32 %v1090_v22, %v1019_v26  ;;  %vm437_vm2 = vcmp.eq.s32.totalorder %v383_v32, %v1793_v2  ;;  %vm543_vm3 = vcmp.eq.s32.totalorder %v383_v32, %v1798_v7  ;;  %vm654_vm4 = vcmp.eq.s32.totalorder %v383_v32, %v1807_v12 }
  0xc9   : > { %v1123_v45 = vadd.f32 %v1091_v24, %v1020_v33  ;;  %vm438_vm5 = vcmp.eq.s32.totalorder %v384_v21, %v1793_v2  ;;  %v470_v46 = vsel %vm437_vm2, %v1778_v55, 0.0  ;;  %vm544_vm0 = vcmp.eq.s32.totalorder %v384_v21, %v1798_v7 }
  0xca   : > { %v1225_v47 = vadd.f32 %v1193_v31, %v1122_v38  ;;  %v471_v48 = vsel %vm438_vm5, %v1778_v55, 0.0  ;;  %v576_v49 = vsel %vm543_vm3, %v1780_v56, 0.0  ;;  %v577_v20 = vsel %vm544_vm0, %v1780_v56, 0.0 }
  0xcb   : > { %v1226_v17 = vadd.f32 %v1194_v14, %v1123_v45  ;;  %v608_v36 = vadd.f32 %v576_v49, %v470_v46  ;;  %v609_v8 = vadd.f32 %v577_v20, %v471_v48  ;;  %vm655_vm6 = vcmp.eq.s32.totalorder %v384_v21, %v1807_v12 }
  0xcc   : > { %v687_v13 = vsel %vm654_vm4, %v1784_v60, 0.0  ;;  %v688_v29 = vsel %vm655_vm6, %v1784_v60, 0.0  ;;  %vm760_vm7 = vcmp.eq.s32.totalorder %v383_v32, %v1836_v50  ;;  %vm761_vm8 = vcmp.eq.s32.totalorder %v384_v21, %v1836_v50 }
  0xcd   : > { %v1256_v51 = vpack.c.bf16 %v1226_v17, %v1225_v47  ;;  %v719_v27 = vadd.f32 %v687_v13, %v608_v36  ;;  %v720_v41 = vadd.f32 %v688_v29, %v609_v8  ;;  %v793_v40 = vsel %vm760_vm7, %v1809_v18, 0.0 }
  0xce   : > { %v794_v42 = vsel %vm761_vm8, %v1809_v18, 0.0  ;;  %vm867_vm9 = vcmp.eq.s32.totalorder %v383_v32, %v1857_v58  ;;  %vm868_vm10 = vcmp.eq.s32.totalorder %v384_v21, %v1857_v58  ;;  %vm970_vm11 = vcmp.eq.s32.totalorder %v383_v32, %v1859_v59 }
  0xcf   : > { %1281 = vmatpush.bf16.msra.mxu0 %v1256_v51  ;;  %v825_v43 = vadd.f32 %v793_v40, %v719_v27  ;;  %v826_v44 = vadd.f32 %v794_v42, %v720_v41  ;;  %v900_v52 = vsel %vm867_vm9, %v1828_v34, 0.0  ;;  %v901_v54 = vsel %vm868_vm10, %v1828_v34, 0.0 }
  0xd0   : > { %vm971_vm12 = vcmp.eq.s32.totalorder %v384_v21, %v1859_v59  ;;  %v1003_v57 = vsel %vm970_vm11, %v1838_v28, 0.0  ;;  %vm1073_vm13 = vcmp.eq.s32.totalorder %v383_v32, %v1878_v10  ;;  %vm1074_vm14 = vcmp.eq.s32.totalorder %v384_v21, %v1878_v10 }
  0xd1   : > { %v932_v62 = vadd.f32 %v900_v52, %v825_v43  ;;  %v933_v25 = vadd.f32 %v901_v54, %v826_v44  ;;  %v1004_v61 = vsel %vm971_vm12, %v1838_v28, 0.0  ;;  %v1106_v3 = vsel %vm1073_vm13, %v1843_v53, 0.0 }
  0xd2   : > { %v1107_v5 = vsel %vm1074_vm14, %v1843_v53, 0.0  ;;  %vm1176_vm15 = vcmp.eq.s32.totalorder %v383_v32, %v1898_v30  ;;  %vm1177_vm1 = vcmp.eq.s32.totalorder %v384_v21, %v1898_v30  ;;  %vm419_vm2 = vcmp.eq.s32.totalorder %v2314_v35, %v1793_v2 }
  0xd3   : > { %v1035_v15 = vadd.f32 %v1003_v57, %v932_v62  ;;  %v1036_v0 = vadd.f32 %v1004_v61, %v933_v25  ;;  %v1209_v16 = vsel %vm1176_vm15, %v1864_v63, 0.0  ;;  %v1210_v1 = vsel %vm1177_vm1, %v1864_v63, 0.0 }
  0xd4   : > { %vm420_vm3 = vcmp.eq.s32.totalorder %v2317_v37, %v1793_v2  ;;  %v452_v6 = vsel %vm419_vm2, %v1778_v55, 0.0  ;;  %vm525_vm4 = vcmp.eq.s32.totalorder %v2314_v35, %v1798_v7  ;;  %vm526_vm5 = vcmp.eq.s32.totalorder %v2317_v37, %v1798_v7 }
  0xd5   : > { %v1138_v9 = vadd.f32 %v1106_v3, %v1035_v15  ;;  %v1139_v11 = vadd.f32 %v1107_v5, %v1036_v0  ;;  %v453_v19 = vsel %vm420_vm3, %v1778_v55, 0.0  ;;  %v558_v39 = vsel %vm525_vm4, %v1780_v56, 0.0 }
  0xd6   : > { %v559_v22 = vsel %vm526_vm5, %v1780_v56, 0.0  ;;  %v590_v23 = vadd.f32 %v558_v39, %v452_v6  ;;  %vm636_vm0 = vcmp.eq.s32.totalorder %v2314_v35, %v1807_v12  ;;  %vm637_vm6 = vcmp.eq.s32.totalorder %v2317_v37, %v1807_v12  ;;  %v1253_v39 = vld [vmem:[%s328_s13] sm:$0x3] }
  0xd7   : > { %v1241_v24 = vadd.f32 %v1209_v16, %v1138_v9  ;;  %v1242_v26 = vadd.f32 %v1210_v1, %v1139_v11  ;;  %v591_v31 = vadd.f32 %v559_v22, %v453_v19  ;;  %v669_v14 = vsel %vm636_vm0, %v1784_v60, 0.0  ;;  %1271 = vst [vmem:[#allocation1] ss:$9 sm:$0xff] %v1253_v39 }
  0xd8   : > { %v670_v32 = vsel %vm637_vm6, %v1784_v60, 0.0  ;;  %v701_v33 = vadd.f32 %v669_v14, %v590_v23  ;;  %vm742_vm7 = vcmp.eq.s32.totalorder %v2314_v35, %v1836_v50  ;;  %vm743_vm8 = vcmp.eq.s32.totalorder %v2317_v37, %v1836_v50 }
  0xd9   : > { %v1264_v21 = vpack.c.bf16 %v1242_v26, %v1241_v24  ;;  %v702_v38 = vadd.f32 %v670_v32, %v591_v31  ;;  %v775_v45 = vsel %vm742_vm7, %v1809_v18, 0.0  ;;  %v776_v46 = vsel %vm743_vm8, %v1809_v18, 0.0 }
  0xda   : > { %v807_v47 = vadd.f32 %v775_v45, %v701_v33  ;;  %vm849_vm9 = vcmp.eq.s32.totalorder %v2314_v35, %v1857_v58  ;;  %vm850_vm10 = vcmp.eq.s32.totalorder %v2317_v37, %v1857_v58  ;;  %vm952_vm11 = vcmp.eq.s32.totalorder %v2314_v35, %v1859_v59 }
  0xdb   : > { %1294 = vmatpush.bf16.msra.mxu1 %v1264_v21  ;;  %v808_v48 = vadd.f32 %v776_v46, %v702_v38  ;;  %v882_v49 = vsel %vm849_vm9, %v1828_v34, 0.0  ;;  %v883_v20 = vsel %vm850_vm10, %v1828_v34, 0.0  ;;  %vm953_vm12 = vcmp.eq.s32.totalorder %v2317_v37, %v1859_v59 }
  0xdc   : > { %v914_v17 = vadd.f32 %v882_v49, %v807_v47  ;;  %v985_v36 = vsel %vm952_vm11, %v1838_v28, 0.0  ;;  %v986_v8 = vsel %vm953_vm12, %v1838_v28, 0.0  ;;  %vm1055_vm13 = vcmp.eq.s32.totalorder %v2314_v35, %v1878_v10 }
  0xdd   : > { %v915_v13 = vadd.f32 %v883_v20, %v808_v48  ;;  %vm1056_vm14 = vcmp.eq.s32.totalorder %v2317_v37, %v1878_v10  ;;  %v1088_v29 = vsel %vm1055_vm13, %v1843_v53, 0.0  ;;  %vm1158_vm15 = vcmp.eq.s32.totalorder %v2314_v35, %v1898_v30 }
  0xde   : > { %v1017_v51 = vadd.f32 %v985_v36, %v914_v17  ;;  %v1089_v27 = vsel %vm1056_vm14, %v1843_v53, 0.0  ;;  %vm1159_vm1 = vcmp.eq.s32.totalorder %v2317_v37, %v1898_v30  ;;  %v1191_v40 = vsel %vm1158_vm15, %v1864_v63, 0.0 }
  0xdf   : > { %v1018_v41 = vadd.f32 %v986_v8, %v915_v13  ;;  %v381_v42 = vadd.s32 144, %v1732_v4  ;;  %v382_v43 = vadd.s32 152, %v1732_v4  ;;  %v1192_v52 = vsel %vm1159_vm1, %v1864_v63, 0.0 }
  0xe0   : > { %v1120_v44 = vadd.f32 %v1088_v29, %v1017_v51  ;;  %v2408_v54 = vadd.s32 8, %v1732_v4  ;;  %vm417_vm2 = vcmp.eq.s32.totalorder %v1732_v4, %v1793_v2  ;;  %vm523_vm6 = vcmp.eq.s32.totalorder %v1732_v4, %v1798_v7 }
  0xe1   : > { %v1121_v35 = vadd.f32 %v1089_v27, %v1018_v41  ;;  %vm435_vm3 = vcmp.eq.s32.totalorder %v381_v42, %v1793_v2  ;;  %vm436_vm4 = vcmp.eq.s32.totalorder %v382_v43, %v1793_v2  ;;  %vm541_vm5 = vcmp.eq.s32.totalorder %v381_v42, %v1798_v7 }
  0xe2   : > { %v1223_v37 = vadd.f32 %v1191_v40, %v1120_v44  ;;  %v468_v57 = vsel %vm435_vm3, %v1778_v55, 0.0  ;;  %v469_v62 = vsel %vm436_vm4, %v1778_v55, 0.0  ;;  %vm542_vm0 = vcmp.eq.s32.totalorder %v382_v43, %v1798_v7 }
  0xe3   : > { %v1224_v25 = vadd.f32 %v1192_v52, %v1121_v35  ;;  %v574_v61 = vsel %vm541_vm5, %v1780_v56, 0.0  ;;  %v575_v3 = vsel %vm542_vm0, %v1780_v56, 0.0  ;;  %vm652_vm7 = vcmp.eq.s32.totalorder %v381_v42, %v1807_v12 }
  0xe4   : > { %v606_v5 = vadd.f32 %v574_v61, %v468_v57  ;;  %v607_v15 = vadd.f32 %v575_v3, %v469_v62  ;;  %vm653_vm8 = vcmp.eq.s32.totalorder %v382_v43, %v1807_v12  ;;  %v685_v0 = vsel %vm652_vm7, %v1784_v60, 0.0 }
  0xe5   : > { %v1255_v16 = vpack.c.bf16 %v1224_v25, %v1223_v37  ;;  %v686_v1 = vsel %vm653_vm8, %v1784_v60, 0.0  ;;  %vm758_vm9 = vcmp.eq.s32.totalorder %v381_v42, %v1836_v50  ;;  %vm759_vm10 = vcmp.eq.s32.totalorder %v382_v43, %v1836_v50 }
  0xe6   : > { %v717_v6 = vadd.f32 %v685_v0, %v606_v5  ;;  %v718_v9 = vadd.f32 %v686_v1, %v607_v15  ;;  %v791_v11 = vsel %vm758_vm9, %v1809_v18, 0.0  ;;  %v792_v19 = vsel %vm759_vm10, %v1809_v18, 0.0 }
  0xe7   : > { %1282 = vmatpush.bf16.msra.mxu0 %v1255_v16  ;;  %vm865_vm11 = vcmp.eq.s32.totalorder %v381_v42, %v1857_v58  ;;  %vm866_vm12 = vcmp.eq.s32.totalorder %v382_v43, %v1857_v58  ;;  %vm968_vm13 = vcmp.eq.s32.totalorder %v381_v42, %v1859_v59  ;;  %vm969_vm14 = vcmp.eq.s32.totalorder %v382_v43, %v1859_v59 }
  0xe8   : > { %v823_v22 = vadd.f32 %v791_v11, %v717_v6  ;;  %v824_v23 = vadd.f32 %v792_v19, %v718_v9  ;;  %v898_v24 = vsel %vm865_vm11, %v1828_v34, 0.0  ;;  %v899_v26 = vsel %vm866_vm12, %v1828_v34, 0.0 }
  0xe9   : > { %v1001_v31 = vsel %vm968_vm13, %v1838_v28, 0.0  ;;  %v1002_v14 = vsel %vm969_vm14, %v1838_v28, 0.0  ;;  %vm1071_vm15 = vcmp.eq.s32.totalorder %v381_v42, %v1878_v10  ;;  %vm1072_vm1 = vcmp.eq.s32.totalorder %v382_v43, %v1878_v10 }
  0xea   : > { %v930_v32 = vadd.f32 %v898_v24, %v823_v22  ;;  %v931_v33 = vadd.f32 %v899_v26, %v824_v23  ;;  %v1104_v21 = vsel %vm1071_vm15, %v1843_v53, 0.0  ;;  %v1105_v38 = vsel %vm1072_vm1, %v1843_v53, 0.0 }
  0xeb   : > { %vm1174_vm3 = vcmp.eq.s32.totalorder %v381_v42, %v1898_v30  ;;  %vm1175_vm4 = vcmp.eq.s32.totalorder %v382_v43, %v1898_v30  ;;  %vm418_vm5 = vcmp.eq.s32.totalorder %v2408_v54, %v1793_v2  ;;  %v450_v45 = vsel %vm417_vm2, %v1778_v55, 0.0 }
  0xec   : > { %v1033_v46 = vadd.f32 %v1001_v31, %v930_v32  ;;  %v1034_v47 = vadd.f32 %v1002_v14, %v931_v33  ;;  %v1207_v48 = vsel %vm1174_vm3, %v1864_v63, 0.0  ;;  %v1208_v49 = vsel %vm1175_vm4, %v1864_v63, 0.0 }
  0xed   : > { %v451_v20 = vsel %vm418_vm5, %v1778_v55, 0.0  ;;  %vm524_vm0 = vcmp.eq.s32.totalorder %v2408_v54, %v1798_v7  ;;  %v556_v17 = vsel %vm523_vm6, %v1780_v56, 0.0  ;;  %vm634_vm7 = vcmp.eq.s32.totalorder %v1732_v4, %v1807_v12 }
  0xee   : > { %v1136_v36 = vadd.f32 %v1104_v21, %v1033_v46  ;;  %v1137_v8 = vadd.f32 %v1105_v38, %v1034_v47  ;;  %v557_v13 = vsel %vm524_vm0, %v1780_v56, 0.0  ;;  %v588_v29 = vadd.f32 %v556_v17, %v450_v45 }
  0xef   : > { %v589_v51 = vadd.f32 %v557_v13, %v451_v20  ;;  %vm635_vm2 = vcmp.eq.s32.totalorder %v2408_v54, %v1807_v12  ;;  %v667_v27 = vsel %vm634_vm7, %v1784_v60, 0.0  ;;  %vm740_vm8 = vcmp.eq.s32.totalorder %v1732_v4, %v1836_v50 }
  0xf0   : > { %v1239_v41 = vadd.f32 %v1207_v48, %v1136_v36  ;;  %v1240_v40 = vadd.f32 %v1208_v49, %v1137_v8  ;;  %v668_v42 = vsel %vm635_vm2, %v1784_v60, 0.0  ;;  %v699_v43 = vadd.f32 %v667_v27, %v588_v29 }
  0xf1   : > { %v700_v44 = vadd.f32 %v668_v42, %v589_v51  ;;  %vm741_vm6 = vcmp.eq.s32.totalorder %v2408_v54, %v1836_v50  ;;  %v773_v52 = vsel %vm740_vm8, %v1809_v18, 0.0  ;;  %vm847_vm9 = vcmp.eq.s32.totalorder %v1732_v4, %v1857_v58 }
  0xf2   : > { %v1263_v35 = vpack.c.bf16 %v1240_v40, %v1239_v41  ;;  %v774_v37 = vsel %vm741_vm6, %v1809_v18, 0.0  ;;  %v805_v57 = vadd.f32 %v773_v52, %v699_v43  ;;  %vm848_vm10 = vcmp.eq.s32.totalorder %v2408_v54, %v1857_v58  ;;  %v1273_v41 = vld [vmem:[#allocation1 + $0x9] sm:$0xff] }
  0xf3   : > { %v806_v62 = vadd.f32 %v774_v37, %v700_v44  ;;  %v880_v25 = vsel %vm847_vm9, %v1828_v34, 0.0  ;;  %v881_v61 = vsel %vm848_vm10, %v1828_v34, 0.0  ;;  %vm950_vm11 = vcmp.eq.s32.totalorder %v1732_v4, %v1859_v59 }
  0xf4   : > { %1295 = vmatpush.bf16.msra.mxu1 %v1263_v35  ;;  %v912_v3 = vadd.f32 %v880_v25, %v805_v57  ;;  %vm951_vm12 = vcmp.eq.s32.totalorder %v2408_v54, %v1859_v59  ;;  %v983_v5 = vsel %vm950_vm11, %v1838_v28, 0.0  ;;  %vm1053_vm13 = vcmp.eq.s32.totalorder %v1732_v4, %v1878_v10 }
  0xf5   : > { %v913_v15 = vadd.f32 %v881_v61, %v806_v62  ;;  %v984_v0 = vsel %vm951_vm12, %v1838_v28, 0.0  ;;  %vm1054_vm14 = vcmp.eq.s32.totalorder %v2408_v54, %v1878_v10  ;;  %v1086_v16 = vsel %vm1053_vm13, %v1843_v53, 0.0 }
  0xf6   : > { %v1015_v1 = vadd.f32 %v983_v5, %v912_v3  ;;  %v1087_v6 = vsel %vm1054_vm14, %v1843_v53, 0.0  ;;  %vm1156_vm15 = vcmp.eq.s32.totalorder %v1732_v4, %v1898_v30  ;;  %vm1157_vm1 = vcmp.eq.s32.totalorder %v2408_v54, %v1898_v30 }
  0xf7   : > { %v1016_v9 = vadd.f32 %v984_v0, %v913_v15  ;;  %v1189_v11 = vsel %vm1156_vm15, %v1864_v63, 0.0  ;;  %v379_v19 = vadd.s32 128, %v1732_v4  ;;  %v1190_v22 = vsel %vm1157_vm1, %v1864_v63, 0.0 }
  0xf8   : > { %v1118_v39 = vadd.f32 %v1086_v16, %v1015_v1  ;;  %v380_v23 = vadd.s32 136, %v1732_v4 }
  0xf9   : > { %v1119_v24 = vadd.f32 %v1087_v6, %v1016_v9  ;;  %vm433_vm3 = vcmp.eq.s32.totalorder %v379_v19, %v1793_v2  ;;  %vm539_vm4 = vcmp.eq.s32.totalorder %v379_v19, %v1798_v7  ;;  %vm650_vm5 = vcmp.eq.s32.totalorder %v379_v19, %v1807_v12 }
  0xfa   : > { %v1221_v26 = vadd.f32 %v1189_v11, %v1118_v39  ;;  %vm434_vm0 = vcmp.eq.s32.totalorder %v380_v23, %v1793_v2  ;;  %v466_v54 = vsel %vm433_vm3, %v1778_v55, 0.0  ;;  %vm540_vm7 = vcmp.eq.s32.totalorder %v380_v23, %v1798_v7 }
  0xfb   : > { %v1222_v31 = vadd.f32 %v1190_v22, %v1119_v24  ;;  %v467_v14 = vsel %vm434_vm0, %v1778_v55, 0.0  ;;  %v572_v32 = vsel %vm539_vm4, %v1780_v56, 0.0  ;;  %v573_v4 = vsel %vm540_vm7, %v1780_v56, 0.0  ;;  %v1272_v56 = vld [vmem:[#allocation1] sm:$0xff] }
  0xfc   : > { %v604_v33 = vadd.f32 %v572_v32, %v466_v54  ;;  %v605_v21 = vadd.f32 %v573_v4, %v467_v14  ;;  %vm651_vm2 = vcmp.eq.s32.totalorder %v380_v23, %v1807_v12  ;;  %v683_v38 = vsel %vm650_vm5, %v1784_v60, 0.0 }
  0xfd   : > { %v1254_v45 = vpack.c.bf16 %v1222_v31, %v1221_v26  ;;  %v684_v2 = vsel %vm651_vm2, %v1784_v60, 0.0  ;;  %vm756_vm8 = vcmp.eq.s32.totalorder %v379_v19, %v1836_v50  ;;  %vm757_vm6 = vcmp.eq.s32.totalorder %v380_v23, %v1836_v50 }
  0xfe   : > { %v715_v7 = vadd.f32 %v683_v38, %v604_v33  ;;  %v716_v46 = vadd.f32 %v684_v2, %v605_v21  ;;  %v789_v55 = vsel %vm756_vm8, %v1809_v18, 0.0  ;;  %v790_v47 = vsel %vm757_vm6, %v1809_v18, 0.0 }
  0xff   : > { %1283 = vmatpush.bf16.msra.mxu0 %v1254_v45  ;;  %vm863_vm9 = vcmp.eq.s32.totalorder %v379_v19, %v1857_v58  ;;  %vm864_vm10 = vcmp.eq.s32.totalorder %v380_v23, %v1857_v58  ;;  %vm966_vm11 = vcmp.eq.s32.totalorder %v379_v19, %v1859_v59  ;;  %vm967_vm12 = vcmp.eq.s32.totalorder %v380_v23, %v1859_v59 }
 0x100   : > { %v821_v60 = vadd.f32 %v789_v55, %v715_v7  ;;  %v822_v12 = vadd.f32 %v790_v47, %v716_v46  ;;  %v896_v50 = vsel %vm863_vm9, %v1828_v34, 0.0  ;;  %v897_v48 = vsel %vm864_vm10, %v1828_v34, 0.0 }
 0x101   : > { %v999_v49 = vsel %vm966_vm11, %v1838_v28, 0.0  ;;  %v1000_v18 = vsel %vm967_vm12, %v1838_v28, 0.0  ;;  %vm1069_vm13 = vcmp.eq.s32.totalorder %v379_v19, %v1878_v10  ;;  %vm1070_vm14 = vcmp.eq.s32.totalorder %v380_v23, %v1878_v10 }
 0x102   : > { %v928_v58 = vadd.f32 %v896_v50, %v821_v60  ;;  %v929_v20 = vadd.f32 %v897_v48, %v822_v12  ;;  %1284 = vmatmul.bf16.vlgmr.msra.gmra.mxu0 %v1272_v56  ;;  %v1102_v59 = vsel %vm1069_vm13, %v1843_v53, 0.0  ;;  %v1103_v17 = vsel %vm1070_vm14, %v1843_v53, 0.0 }
 0x103   : > { %vm1172_vm15 = vcmp.eq.s32.totalorder %v379_v19, %v1898_v30  ;;  %vm1173_vm1 = vcmp.eq.s32.totalorder %v380_v23, %v1898_v30 }
 0x104   : > { %v1031_v34 = vadd.f32 %v999_v49, %v928_v58  ;;  %v1032_v36 = vadd.f32 %v1000_v18, %v929_v20  ;;  %v1205_v28 = vsel %vm1172_vm15, %v1864_v63, 0.0  ;;  %v1206_v8 = vsel %vm1173_vm1, %v1864_v63, 0.0 }
 0x106   : > { %v1134_v13 = vadd.f32 %v1102_v59, %v1031_v34  ;;  %v1135_v10 = vadd.f32 %v1103_v17, %v1032_v36 }
 0x108   : > { %v1237_v29 = vadd.f32 %v1205_v28, %v1134_v13  ;;  %v1238_v51 = vadd.f32 %v1206_v8, %v1135_v10 }
 0x10a   : > { %v1262_v27 = vpack.c.bf16 %v1238_v51, %v1237_v29 }
 0x10c   : > { %1296 = vmatpush.bf16.msra.mxu1 %v1262_v27 }
 0x10f   : > { %1297 = vmatmul.bf16.vlgmr.msra.gmra.mxu1 %v1273_v41 }
 0x17f   : > { %v1285_v53 = vpop.f32.mrf.mxu0 }
 0x187   : > { %v1287_v40 = vpop.f32.mrf.mxu0 }
 0x18c   : > { %v1298_v30 = vpop.f32.mrf.mxu1 }
 0x18d   : > { %v1299_v42 = vadd.f32 %v1298_v30, %v1285_v53 }
 0x18f   : > { %1302 = vst [vmem:[%s335_s16] sm:$0x3] %v1299_v42 }
 0x194   : > { %v1300_v43 = vpop.f32.mrf.mxu1 }
 0x195 PF: > { %s19_s23 = sadd.s32 1, %s1611_s23   ;;  %s2562_s21 = smov %s1607_s22 }
 0x196   : > { %p16_p9 = scmp.ge.s32.totalorder %s19_s23, 6   ;;  %s2563_s22 = smov %s2565_s30 }
 0x198   :  { %18 = sbr.rel (!%p16_p9) target bundleno = 4 (0x4), region = 94 }
 0x19d   :  { %1328 = vsyncpa [#allocation3], 1 }
 0x19e   :  { %1330 = vsyncpa [#allocation3 + $0x1], 1 }
 0x19f   :  { %1331 = vsyncpa [#allocation5], 1 }
 0x1a0   :  { %1332 = vsyncpa [#allocation8], 1 }

</bundles_post_ra>
